<compile_context>
chip_gen: v6e
topology: v6e:2x2x1
jax: 0.10.0
libtpu: 0.0.40
codegen_flags: <defaults>
</compile_context>

<pallas_src>
import functools

import jax
import jax.numpy as jnp
from jax.experimental import pallas as pl
from jax.experimental.pallas import tpu as pltpu


# ------------------------------ fused Pallas kernel ------------------------------

def _dwsep_kernel(x_ref, wdw_ref, bdw_ref, wpw_ref, bpw_ref, o_ref, *, TH, W):
    """One (image, row-tile) step of fused depthwise-3x3(s1,p1) + pointwise-1x1.

    x_ref   : (1, H+2, W+2, Cin)  bf16  full zero-padded image (DMA'd once per image)
    wdw_ref : (3, 3, Cin)         bf16  depthwise weights
    bdw_ref : (1, Cin)            f32   depthwise bias
    wpw_ref : (Cin, Cout)         bf16  pointwise weights
    bpw_ref : (1, Cout)           f32   pointwise bias
    o_ref   : (1, Cout, TH*W)     f32   output row tile, NCHW layout, lane-dense
    """
    t = pl.program_id(1)
    row0 = pl.multiple_of(t * TH, TH)

    # Halo window for this row tile: (TH+2, W+2, Cin).  The padded-H axis is a leading
    # (non-lane/sublane) axis, so the dynamic slice is a cheap base-offset.
    xp = x_ref[0, pl.ds(row0, TH + 2), :, :]
    Cin = xp.shape[-1]

    # Hoist the 3 W-direction (sublane) taps once; H-direction taps below are free
    # leading-axis slices of these small bands.
    xc = (xp[:, 0:W, :], xp[:, 1:W + 1, :], xp[:, 2:W + 2, :])     # each (TH+2, W, Cin)

    w = wdw_ref[...]                                               # (3, 3, Cin) bf16
    # bf16 multiply, f32 accumulate; 3 partial sums shorten the 9-deep serial add chain.
    parts = []
    for kh in range(3):
        p = (xc[0][kh:kh + TH] * w[kh, 0, :]).astype(jnp.float32)
        p = p + (xc[1][kh:kh + TH] * w[kh, 1, :]).astype(jnp.float32)
        p = p + (xc[2][kh:kh + TH] * w[kh, 2, :]).astype(jnp.float32)
        parts.append(p)
    y = (parts[0] + parts[1]) + (parts[2] + bdw_ref[0])            # (TH, W, Cin) f32

    # Pointwise 1x1 == (TH*W, Cin) @ (Cin, Cout) on the MXU: bf16 inputs, f32 accumulate.
    y2 = y.reshape(TH * W, Cin).astype(jnp.bfloat16)
    out = jnp.dot(y2, wpw_ref[...], preferred_element_type=jnp.float32)   # (TH*W, Cout)
    out = out + bpw_ref[...]                                              # f32 bias epilogue
    # One small in-kernel transpose so the HBM store is already NCHW-layout and lane-dense.
    o_ref[0] = jnp.transpose(out)                                         # (Cout, TH*W)


def _pick_row_tile(H, W):
    """Smallest row tile TH that divides H with TH*W a multiple of 128 (lane-dense output
    block, MXU M >= 128); falls back to the whole image."""
    target = max(1, -(-128 // W))          # ceil(128 / W)
    for cand in range(target, H):
        if H % cand == 0 and (cand * W) % 128 == 0:
            return cand
    return H


def dwsep_conv_fused(xp_nhwc, w_dw, b_dw, w_pw, b_pw, *, H, W):
    """xp_nhwc: (N, H+2, W+2, Cin) bf16 zero-padded -> (N, Cout, H*W) f32 (NCHW layout)."""
    N = xp_nhwc.shape[0]
    Cin = xp_nhwc.shape[-1]
    Cout = w_pw.shape[1]
    TH = _pick_row_tile(H, W)
    T = H // TH

    kernel = functools.partial(_dwsep_kernel, TH=TH, W=W)

    flops = N * H * W * (2 * Cin * Cout + 2 * 9 * Cin)
    bytes_accessed = (N * (H + 2) * (W + 2) * Cin * 2          # bf16 padded activations in
                      + N * H * W * Cout * 4                   # f32 activations out
                      + (9 * Cin + Cin * Cout) * 2             # bf16 weights
                      + (Cin + Cout) * 4)                      # f32 biases

    # TODO(synk): for very large H*W*Cin the full padded image no longer fits VMEM; switch
    # the input to an overlapping (1, TH+2, W+2, Cin) halo block (pl.Element / manual DMA).
    return pl.pallas_call(
        kernel,
        out_shape=jax.ShapeDtypeStruct((N, Cout, H * W), jnp.float32),
        grid=(N, T),
        in_specs=[
            # Full padded image; block index depends only on n -> DMA'd once per image and
            # reused across its T row-tile steps.
            pl.BlockSpec((1, H + 2, W + 2, Cin), lambda n, t: (n, 0, 0, 0)),
            pl.BlockSpec((3, 3, Cin), lambda n, t: (0, 0, 0)),
            pl.BlockSpec((1, Cin), lambda n, t: (0, 0)),
            pl.BlockSpec((Cin, Cout), lambda n, t: (0, 0)),
            pl.BlockSpec((1, Cout), lambda n, t: (0, 0)),
        ],
        out_specs=pl.BlockSpec((1, Cout, TH * W), lambda n, t: (n, 0, t)),
        compiler_params=pltpu.CompilerParams(
            # No cross-step reduction: both axes parallel (v7x megacore splits them).
            dimension_semantics=("parallel", "parallel"),
            vmem_limit_bytes=48 * 1024 * 1024,   # <= v7x's 64 MiB physical; fine on v5e/v6e
        ),
        cost_estimate=pl.CostEstimate(flops=flops, transcendentals=0,
                                      bytes_accessed=bytes_accessed),
    )(xp_nhwc, w_dw, b_dw, w_pw, b_pw)


# ---------------------------------- module glue ----------------------------------

@jax.jit
def depthwise_separable_conv(x_nchw, params):
    """PyTorch DepthwiseSeparableConv.forward (kernel_size=3, stride=1, padding=1)."""
    # TODO(synk): only the module's default config (3x3, stride 1, padding 1) is implemented.
    N, Cin, H, W = x_nchw.shape
    Cout = params["w_pw"].shape[1]
    # One relayout pass: NCHW -> NHWC + bf16 cast (halves activation DMA) + zero-pad halo.
    # TODO(synk): a model kept NHWC end-to-end would skip this input-side pass entirely.
    x = jnp.transpose(x_nchw, (0, 2, 3, 1)).astype(jnp.bfloat16)
    xp = jnp.pad(x, ((0, 0), (1, 1), (1, 1), (0, 0)))
    out = dwsep_conv_fused(
        xp,
        params["w_dw"].astype(jnp.bfloat16),
        params["b_dw"].reshape(1, Cin).astype(jnp.float32),
        params["w_pw"].astype(jnp.bfloat16),
        params["b_pw"].reshape(1, Cout).astype(jnp.float32),
        H=H, W=W)
    # (N, Cout, H*W) -> (N, Cout, H, W): the kernel already wrote NCHW layout, so this is a
    # free metadata reshape (no HBM transpose pass on the output side).
    return out.reshape(N, Cout, H, W)


def reference_forward(x_nchw, params):
    """Pure-JAX (lax.conv) f32 reference matching the PyTorch module."""
    Cin = params["w_dw"].shape[-1]
    # depthwise: weight (Cin, 1, 3, 3), groups = Cin
    w_dw_oihw = jnp.transpose(params["w_dw"], (2, 0, 1))[:, None, :, :]
    y = jax.lax.conv_general_dilated(
        x_nchw, w_dw_oihw, window_strides=(1, 1), padding=((1, 1), (1, 1)),
        feature_group_count=Cin, dimension_numbers=("NCHW", "OIHW", "NCHW"),
        precision=jax.lax.Precision.HIGHEST)
    y = y + params["b_dw"][None, :, None, None]
    # pointwise: weight (Cout, Cin, 1, 1)
    w_pw_oihw = jnp.transpose(params["w_pw"], (1, 0))[:, :, None, None]
    z = jax.lax.conv_general_dilated(
        y, w_pw_oihw, window_strides=(1, 1), padding=((0, 0), (0, 0)),
        dimension_numbers=("NCHW", "OIHW", "NCHW"),
        precision=jax.lax.Precision.HIGHEST)
    return z + params["b_pw"][None, :, None, None]


def init_params(key, c_in, c_out):
    k1, k2, k3, k4 = jax.random.split(key, 4)
    return dict(
        w_dw=0.2 * jax.random.normal(k1, (3, 3, c_in), jnp.float32),
        b_dw=0.1 * jax.random.normal(k2, (c_in,), jnp.float32),
        w_pw=0.1 * jax.random.normal(k3, (c_in, c_out), jnp.float32),
        b_pw=0.1 * jax.random.normal(k4, (c_out,), jnp.float32),
    )


if __name__ == "__main__":
    key = jax.random.PRNGKey(0)
    k_params, k_x = jax.random.split(key)
    N, C_in, H, W, C_out = 2, 64, 16, 16, 128

    params = init_params(k_params, C_in, C_out)
    x = jax.random.normal(k_x, (N, C_in, H, W), dtype=jnp.float32)   # NCHW like PyTorch

    out = depthwise_separable_conv(x, params)
    jax.block_until_ready(out)

    ref = reference_forward(x, params)
    assert out.shape == (N, C_out, H, W)
    assert bool(jnp.all(jnp.isfinite(out)))
    # bf16 activations/weights in the kernel vs f32 HIGHEST reference (intentional tradeoff)
    # -> generous but meaningful tolerance.
    assert bool(jnp.allclose(out, ref, rtol=5e-2, atol=5e-2)), \
        float(jnp.max(jnp.abs(out - ref)))
    print("KERNEL_OK")
</pallas_src>

<mosaic_0001>
module attributes {stable_mosaic.version = 11 : i64} {
  func.func @_dwsep_kernel(%arg0: i32, %arg1: i32, %arg2: memref<1x18x18x64xbf16, #tpu.memory_space<vmem>>, %arg3: memref<3x3x64xbf16, #tpu.memory_space<vmem>>, %arg4: memref<1x64xf32, #tpu.memory_space<vmem>>, %arg5: memref<64x128xbf16, #tpu.memory_space<vmem>>, %arg6: memref<1x128xf32, #tpu.memory_space<vmem>>, %arg7: memref<1x128x128xf32, #tpu.memory_space<vmem>>) attributes {dimension_semantics = [#tpu.dimension_semantics<parallel>, #tpu.dimension_semantics<parallel>], iteration_bounds = array<i64: 2, 2>, scalar_prefetch = 0 : i64, scratch_operands = 0 : i64, tpu.core_type = #tpu.core_type<tc>, window_params = [{transform_indices = @transform_0, window_bounds = array<i64: 1, 18, 18, 64>}, {pipeline_mode = #tpu.pipeline_mode<synchronous>, transform_indices = @transform_1, window_bounds = array<i64: 3, 3, 64>}, {pipeline_mode = #tpu.pipeline_mode<synchronous>, transform_indices = @transform_2, window_bounds = array<i64: 1, 64>}, {pipeline_mode = #tpu.pipeline_mode<synchronous>, transform_indices = @transform_3, window_bounds = array<i64: 64, 128>}, {pipeline_mode = #tpu.pipeline_mode<synchronous>, transform_indices = @transform_4, window_bounds = array<i64: 1, 128>}, {transform_indices = @transform_5, window_bounds = array<i64: 1, 128, 128>}]} {
    %c8_i32 = arith.constant 8 : i32
    %0 = arith.muli %arg1, %c8_i32 : i32
    %1 = tpu.assume_multiple %0, 8 : i32
    %c0 = arith.constant 0 : index
    %2 = arith.index_cast %1 : i32 to index
    %c0_0 = arith.constant 0 : index
    %c0_1 = arith.constant 0 : index
    %3 = vector.load %arg2[%c0, %2, %c0_0, %c0_1] : memref<1x18x18x64xbf16, #tpu.memory_space<vmem>>, vector<1x10x18x64xbf16>
    %4 = vector.shape_cast %3 : vector<1x10x18x64xbf16> to vector<10x18x64xbf16>
    %5 = vector.extract_strided_slice %4 {offsets = [0, 0, 0], sizes = [10, 16, 64], strides = [1, 1, 1]} : vector<10x18x64xbf16> to vector<10x16x64xbf16>
    %6 = vector.extract_strided_slice %4 {offsets = [0, 1, 0], sizes = [10, 16, 64], strides = [1, 1, 1]} : vector<10x18x64xbf16> to vector<10x16x64xbf16>
    %7 = vector.extract_strided_slice %4 {offsets = [0, 2, 0], sizes = [10, 16, 64], strides = [1, 1, 1]} : vector<10x18x64xbf16> to vector<10x16x64xbf16>
    %c0_2 = arith.constant 0 : index
    %c0_3 = arith.constant 0 : index
    %c0_4 = arith.constant 0 : index
    %8 = vector.load %arg3[%c0_2, %c0_3, %c0_4] : memref<3x3x64xbf16, #tpu.memory_space<vmem>>, vector<3x3x64xbf16>
    %9 = vector.extract_strided_slice %5 {offsets = [0, 0, 0], sizes = [8, 16, 64], strides = [1, 1, 1]} : vector<10x16x64xbf16> to vector<8x16x64xbf16>
    %10 = vector.extract_strided_slice %8 {offsets = [0, 0, 0], sizes = [1, 1, 64], strides = [1, 1, 1]} : vector<3x3x64xbf16> to vector<1x1x64xbf16>
    %11 = vector.shape_cast %10 : vector<1x1x64xbf16> to vector<64xbf16>
    %12 = vector.shape_cast %11 : vector<64xbf16> to vector<1x1x64xbf16>
    %13 = vector.broadcast %12 : vector<1x1x64xbf16> to vector<8x16x64xbf16>
    %14 = arith.mulf %9, %13 : vector<8x16x64xbf16>
    %15 = arith.extf %14 : vector<8x16x64xbf16> to vector<8x16x64xf32>
    %16 = vector.extract_strided_slice %6 {offsets = [0, 0, 0], sizes = [8, 16, 64], strides = [1, 1, 1]} : vector<10x16x64xbf16> to vector<8x16x64xbf16>
    %17 = vector.extract_strided_slice %8 {offsets = [0, 1, 0], sizes = [1, 1, 64], strides = [1, 1, 1]} : vector<3x3x64xbf16> to vector<1x1x64xbf16>
    %18 = vector.shape_cast %17 : vector<1x1x64xbf16> to vector<64xbf16>
    %19 = vector.shape_cast %18 : vector<64xbf16> to vector<1x1x64xbf16>
    %20 = vector.broadcast %19 : vector<1x1x64xbf16> to vector<8x16x64xbf16>
    %21 = arith.mulf %16, %20 : vector<8x16x64xbf16>
    %22 = arith.extf %21 : vector<8x16x64xbf16> to vector<8x16x64xf32>
    %23 = arith.addf %15, %22 : vector<8x16x64xf32>
    %24 = vector.extract_strided_slice %7 {offsets = [0, 0, 0], sizes = [8, 16, 64], strides = [1, 1, 1]} : vector<10x16x64xbf16> to vector<8x16x64xbf16>
    %25 = vector.extract_strided_slice %8 {offsets = [0, 2, 0], sizes = [1, 1, 64], strides = [1, 1, 1]} : vector<3x3x64xbf16> to vector<1x1x64xbf16>
    %26 = vector.shape_cast %25 : vector<1x1x64xbf16> to vector<64xbf16>
    %27 = vector.shape_cast %26 : vector<64xbf16> to vector<1x1x64xbf16>
    %28 = vector.broadcast %27 : vector<1x1x64xbf16> to vector<8x16x64xbf16>
    %29 = arith.mulf %24, %28 : vector<8x16x64xbf16>
    %30 = arith.extf %29 : vector<8x16x64xbf16> to vector<8x16x64xf32>
    %31 = arith.addf %23, %30 : vector<8x16x64xf32>
    %32 = vector.extract_strided_slice %5 {offsets = [1, 0, 0], sizes = [8, 16, 64], strides = [1, 1, 1]} : vector<10x16x64xbf16> to vector<8x16x64xbf16>
    %33 = vector.extract_strided_slice %8 {offsets = [1, 0, 0], sizes = [1, 1, 64], strides = [1, 1, 1]} : vector<3x3x64xbf16> to vector<1x1x64xbf16>
    %34 = vector.shape_cast %33 : vector<1x1x64xbf16> to vector<64xbf16>
    %35 = vector.shape_cast %34 : vector<64xbf16> to vector<1x1x64xbf16>
    %36 = vector.broadcast %35 : vector<1x1x64xbf16> to vector<8x16x64xbf16>
    %37 = arith.mulf %32, %36 : vector<8x16x64xbf16>
    %38 = arith.extf %37 : vector<8x16x64xbf16> to vector<8x16x64xf32>
    %39 = vector.extract_strided_slice %6 {offsets = [1, 0, 0], sizes = [8, 16, 64], strides = [1, 1, 1]} : vector<10x16x64xbf16> to vector<8x16x64xbf16>
    %40 = vector.extract_strided_slice %8 {offsets = [1, 1, 0], sizes = [1, 1, 64], strides = [1, 1, 1]} : vector<3x3x64xbf16> to vector<1x1x64xbf16>
    %41 = vector.shape_cast %40 : vector<1x1x64xbf16> to vector<64xbf16>
    %42 = vector.shape_cast %41 : vector<64xbf16> to vector<1x1x64xbf16>
    %43 = vector.broadcast %42 : vector<1x1x64xbf16> to vector<8x16x64xbf16>
    %44 = arith.mulf %39, %43 : vector<8x16x64xbf16>
    %45 = arith.extf %44 : vector<8x16x64xbf16> to vector<8x16x64xf32>
    %46 = arith.addf %38, %45 : vector<8x16x64xf32>
    %47 = vector.extract_strided_slice %7 {offsets = [1, 0, 0], sizes = [8, 16, 64], strides = [1, 1, 1]} : vector<10x16x64xbf16> to vector<8x16x64xbf16>
    %48 = vector.extract_strided_slice %8 {offsets = [1, 2, 0], sizes = [1, 1, 64], strides = [1, 1, 1]} : vector<3x3x64xbf16> to vector<1x1x64xbf16>
    %49 = vector.shape_cast %48 : vector<1x1x64xbf16> to vector<64xbf16>
    %50 = vector.shape_cast %49 : vector<64xbf16> to vector<1x1x64xbf16>
    %51 = vector.broadcast %50 : vector<1x1x64xbf16> to vector<8x16x64xbf16>
    %52 = arith.mulf %47, %51 : vector<8x16x64xbf16>
    %53 = arith.extf %52 : vector<8x16x64xbf16> to vector<8x16x64xf32>
    %54 = arith.addf %46, %53 : vector<8x16x64xf32>
    %55 = vector.extract_strided_slice %5 {offsets = [2, 0, 0], sizes = [8, 16, 64], strides = [1, 1, 1]} : vector<10x16x64xbf16> to vector<8x16x64xbf16>
    %56 = vector.extract_strided_slice %8 {offsets = [2, 0, 0], sizes = [1, 1, 64], strides = [1, 1, 1]} : vector<3x3x64xbf16> to vector<1x1x64xbf16>
    %57 = vector.shape_cast %56 : vector<1x1x64xbf16> to vector<64xbf16>
    %58 = vector.shape_cast %57 : vector<64xbf16> to vector<1x1x64xbf16>
    %59 = vector.broadcast %58 : vector<1x1x64xbf16> to vector<8x16x64xbf16>
    %60 = arith.mulf %55, %59 : vector<8x16x64xbf16>
    %61 = arith.extf %60 : vector<8x16x64xbf16> to vector<8x16x64xf32>
    %62 = vector.extract_strided_slice %6 {offsets = [2, 0, 0], sizes = [8, 16, 64], strides = [1, 1, 1]} : vector<10x16x64xbf16> to vector<8x16x64xbf16>
    %63 = vector.extract_strided_slice %8 {offsets = [2, 1, 0], sizes = [1, 1, 64], strides = [1, 1, 1]} : vector<3x3x64xbf16> to vector<1x1x64xbf16>
    %64 = vector.shape_cast %63 : vector<1x1x64xbf16> to vector<64xbf16>
    %65 = vector.shape_cast %64 : vector<64xbf16> to vector<1x1x64xbf16>
    %66 = vector.broadcast %65 : vector<1x1x64xbf16> to vector<8x16x64xbf16>
    %67 = arith.mulf %62, %66 : vector<8x16x64xbf16>
    %68 = arith.extf %67 : vector<8x16x64xbf16> to vector<8x16x64xf32>
    %69 = arith.addf %61, %68 : vector<8x16x64xf32>
    %70 = vector.extract_strided_slice %7 {offsets = [2, 0, 0], sizes = [8, 16, 64], strides = [1, 1, 1]} : vector<10x16x64xbf16> to vector<8x16x64xbf16>
    %71 = vector.extract_strided_slice %8 {offsets = [2, 2, 0], sizes = [1, 1, 64], strides = [1, 1, 1]} : vector<3x3x64xbf16> to vector<1x1x64xbf16>
    %72 = vector.shape_cast %71 : vector<1x1x64xbf16> to vector<64xbf16>
    %73 = vector.shape_cast %72 : vector<64xbf16> to vector<1x1x64xbf16>
    %74 = vector.broadcast %73 : vector<1x1x64xbf16> to vector<8x16x64xbf16>
    %75 = arith.mulf %70, %74 : vector<8x16x64xbf16>
    %76 = arith.extf %75 : vector<8x16x64xbf16> to vector<8x16x64xf32>
    %77 = arith.addf %69, %76 : vector<8x16x64xf32>
    %78 = arith.addf %31, %54 : vector<8x16x64xf32>
    %c0_5 = arith.constant 0 : index
    %c0_6 = arith.constant 0 : index
    %79 = vector.load %arg4[%c0_5, %c0_6] : memref<1x64xf32, #tpu.memory_space<vmem>>, vector<1x64xf32>
    %80 = vector.shape_cast %79 : vector<1x64xf32> to vector<64xf32>
    %81 = vector.shape_cast %80 : vector<64xf32> to vector<1x1x64xf32>
    %82 = vector.broadcast %81 : vector<1x1x64xf32> to vector<8x16x64xf32>
    %83 = arith.addf %77, %82 : vector<8x16x64xf32>
    %84 = arith.addf %78, %83 : vector<8x16x64xf32>
    %85 = vector.shape_cast %84 : vector<8x16x64xf32> to vector<128x64xf32>
    %86 = arith.truncf %85 : vector<128x64xf32> to vector<128x64xbf16>
    %c0_7 = arith.constant 0 : index
    %c0_8 = arith.constant 0 : index
    %87 = vector.load %arg5[%c0_7, %c0_8] : memref<64x128xbf16, #tpu.memory_space<vmem>>, vector<64x128xbf16>
    %cst = arith.constant dense<0.000000e+00> : vector<128x128xf32>
    %88 = tpu.matmul %86, %87, %cst {dimension_numbers = #tpu.dot_dimension_numbers<[1], [0], [0], [1], [0, 0, 1, 1], [], []>} : vector<128x64xbf16>, vector<64x128xbf16>, vector<128x128xf32> -> vector<128x128xf32>
    %c0_9 = arith.constant 0 : index
    %c0_10 = arith.constant 0 : index
    %89 = vector.load %arg6[%c0_9, %c0_10] : memref<1x128xf32, #tpu.memory_space<vmem>>, vector<1x128xf32>
    %90 = vector.broadcast %89 : vector<1x128xf32> to vector<128x128xf32>
    %91 = arith.addf %88, %90 : vector<128x128xf32>
    %92 = tpu.transpose %91, [1, 0] : vector<128x128xf32> -> vector<128x128xf32>
    %c0_11 = arith.constant 0 : index
    %c0_12 = arith.constant 0 : index
    %c0_13 = arith.constant 0 : index
    %93 = vector.load %arg7[%c0_11, %c0_12, %c0_13] : memref<1x128x128xf32, #tpu.memory_space<vmem>>, vector<1x128x128xf32>
    %94 = vector.shape_cast %93 : vector<1x128x128xf32> to vector<128x128xf32>
    %95 = vector.shape_cast %92 : vector<128x128xf32> to vector<1x128x128xf32>
    tpu.vector_store %arg7[%c0_11, %c0_12, %c0_13], %95 {strides = array<i32>} : memref<1x128x128xf32, #tpu.memory_space<vmem>>, vector<1x128x128xf32>,
    return
  }
  func.func @transform_0(%arg0: i32, %arg1: i32) -> (i32, i32, i32, i32) {
    %c0_i32 = arith.constant 0 : i32
    %c0_i32_0 = arith.constant 0 : i32
    %c0_i32_1 = arith.constant 0 : i32
    %c0_i32_2 = arith.constant 0 : i32
    return %arg0, %c0_i32, %c0_i32_0, %c0_i32_1 : i32, i32, i32, i32
  }
  func.func @transform_1(%arg0: i32, %arg1: i32) -> (i32, i32, i32) {
    %c0_i32 = arith.constant 0 : i32
    %c0_i32_0 = arith.constant 0 : i32
    %c0_i32_1 = arith.constant 0 : i32
    %c0_i32_2 = arith.constant 0 : i32
    return %c0_i32, %c0_i32_0, %c0_i32_1 : i32, i32, i32
  }
  func.func @transform_2(%arg0: i32, %arg1: i32) -> (i32, i32) {
    %c0_i32 = arith.constant 0 : i32
    %c0_i32_0 = arith.constant 0 : i32
    %c0_i32_1 = arith.constant 0 : i32
    return %c0_i32, %c0_i32_0 : i32, i32
  }
  func.func @transform_3(%arg0: i32, %arg1: i32) -> (i32, i32) {
    %c0_i32 = arith.constant 0 : i32
    %c0_i32_0 = arith.constant 0 : i32
    %c0_i32_1 = arith.constant 0 : i32
    return %c0_i32, %c0_i32_0 : i32, i32
  }
  func.func @transform_4(%arg0: i32, %arg1: i32) -> (i32, i32) {
    %c0_i32 = arith.constant 0 : i32
    %c0_i32_0 = arith.constant 0 : i32
    %c0_i32_1 = arith.constant 0 : i32
    return %c0_i32, %c0_i32_0 : i32, i32
  }
  func.func @transform_5(%arg0: i32, %arg1: i32) -> (i32, i32, i32) {
    %c0_i32 = arith.constant 0 : i32
    %c0_i32_0 = arith.constant 0 : i32
    return %arg0, %c0_i32, %arg1 : i32, i32, i32
  }
}

</mosaic_0001>

<bundles_post_ra>
// kernel: depthwise_separable_conv.1
= control target key start
LH: loop header
LB: loop body
LE: loop exit
PB: predicated region body
PF: predicated region fallthrough
CT: control target
= control target key end

     0   :  { %s1996_s18 = smov 0   ;;  %s1998_s19 = smov 0   ;;  %s2764_s0 = inlined_call_operand.vmem [shape: bf16[2,18,18,64], index: 0, kind: input, shape index: {}]   ;;  %s2765_s1 = inlined_call_operand.vmem [shape: bf16[3,3,64], index: 1, kind: input, shape index: {}]   ;;  %s2766_s2 = inlined_call_operand.vmem [shape: f32[1,64], index: 2, kind: input, shape index: {}]   ;;  %s2767_s3 = inlined_call_operand.vmem [shape: bf16[64,128], index: 3, kind: input, shape index: {}]   ;;  %s2768_s4 = inlined_call_operand.vmem [shape: f32[1,128], index: 4, kind: input, shape index: {}]   ;;  %s2769_s5 = inlined_call_operand.vmem [shape: f32[2,128,256], index: 5, kind: output, shape index: {}]  }
   0x1   :  { %s2000_s20 = smov 0   ;;  %s2002_s21 = smov 0  }
   0x2   :  { %s2004_s22 = smov 0   ;;  %s2006_s23 = smov 0  }
   0x3   :  { %s2008_s24 = smov 0  }
   0x4 LB: > { %s24_s25 = sadd.s32 1, %s1956_s22  ;;  %s27_s26 = sadd.s32 1, %s1960_s23  ;;  %s1964_s24 = sphi %s2008_s24, %s15_s24   ;;  %s1960_s23 = sphi %s2006_s23, %s2776_s23   ;;  %s1956_s22 = sphi %s2004_s22, %s2775_s22   ;;  %s1952_s21 = sphi %s2002_s21, %s2774_s21   ;;  %s1948_s20 = sphi %s2000_s20, %s2773_s20   ;;  %s1944_s19 = sphi %s1998_s19, %s2772_s19   ;;  %s1940_s18 = sphi %s1996_s18, %s2771_s18  }
   0x5   : > { %p25_p0 = scmp.ge.s32.totalorder %s24_s25, 2  ;;  %s1765_s27 = sadd.s32 4294967295, %s1964_s24  }
   0x6   : > { %p156_p1 = scmp.ne.s32.totalorder %s1944_s19, %s1940_s18  ;;  %p157_p2 = scmp.eq.s32.totalorder %s1765_s27, 3 }
   0x7   : > { %s2778_s25 = smov (%p25_p0, %s24_s25), 0  ;;  %s2780_s26 = smov (!%p25_p0, %s27_s26), %s1960_s23 }
   0x8   : > { %s142_s28 = ssub.s32 %s1956_s22, %s2778_s25  ;;  %p29_p3 = scmp.ge.s32.totalorder %s2780_s26, 2 }
   0x9   : > { %p1769_p4 = scmp.ge.s32.totalorder %s1964_s24, 1  ;;  %p2042_p5 = por %p157_p2, %p156_p1 }
   0xa   : > { %p201_p6 = scmp.lt.s32.totalorder %s1964_s24, 5  ;;  %s2782_s26 = smov (%p29_p3, %s2780_s26), 0 }
   0xb   : > { %s141_s30 = ssub.s32 %s1960_s23, %s2782_s26  ;;  %s146_s7 = sadd.s32 1, %s1944_s19 }
   0xc   : > { %p202_p7 = pnand %p1769_p4, %p201_p6  ;;  %s143_s6 = sor.u32 %s142_s28, %s141_s30 }
   0xd   : > { %p144_p8 = scmp.eq.s32.totalorder %s143_s6, 0  ;;  %p228_p9 = scmp.lt.s32.totalorder (!%p202_p7), %s1952_s21, 1 }
   0xe   : > { %205 = sbr.rel (%p202_p7) target bundleno = 575 (0x23f), region = 40 }
   0xf   : > { %s2053_s8 = scalar_select %p144_p8, %s1944_s19, %s146_s7  }
  0x10   : > { %s1803_s14 = smul.u32 (!%p202_p7), 96, %s1948_s20  ;;  %s225_s7 = sand.u32 (!%p202_p7), 1, %s1940_s18  }
  0x11   : > { %s1770_s9 = sshll.u32 (!%p202_p7), %s225_s7, 7 }
  0x12   : > { %s2702_s10 = scalar_lea.vmem (!%p202_p7), [#allocation2], %s1770_s9 }
  0x13   : > { %v1905_v0 = vld [vmem:[%s2767_s3 + $0x18] sm:$0xff]   ;;  %v274_v1 = vlaneseq  ;;  %v1906_v2 = vld [vmem:[%s2767_s3 + $0x10] sm:$0xff]   ;;  %s229_s13 = scalar_select %p228_p9, %s1952_s21, 1  ;;  %v1907_v4 = vld [vmem:[%s2767_s3 + $0x8] sm:$0xff]   ;;  %vm550_vm0 = vcmask 1045504   ;;  %vm397_vm1 = vcmask 1046528  }
  0x14   : > { %1816 = vmatprep.subr.bf16.mxu0 %v1905_v0  ;;  %1840 = vmatprep.subr.bf16.mxu1 %v1905_v0  ;;  %v268_v5 = vld [vmem:[%s2765_s1] sm:$0x3]  ;;  %v269_v6 = vld [vmem:[%s2765_s1 + $0x2] sm:$0x3]  ;;  %v270_v7 = vld [vmem:[%s2765_s1 + $0x4] sm:$0x3] }
  0x15   : > { %1817 = vmatpush3.bf16.msra.mxu0 %v1905_v0  ;;  %v275_v3 = vshrl.u32 %v274_v1, 7  ;;  %1844 = vmatpush3.bf16.msra.mxu1 %v1905_v0  ;;  %s1848_s17 = smul.u32 216, %s229_s13  ;;  %v272_v8 = vpack.i.b16 %v268_v5, %v268_v5  ;;  %v314_v10 = vshrl.u32 %v268_v5, 16  ;;  %v624_v12 = vpack.i.b16 %v269_v6, %v269_v6  ;;  %v1908_v19 = vld [vmem:[%s2767_s3] sm:$0xff]   ;;  %s1799_s18 = sshll.u32 (%p2042_p5), %s1952_s21, 5 }
  0x16   : > { %1818 = vmatprep.subr.bf16.mxu0 %v1906_v2  ;;  %1841 = vmatprep.subr.bf16.mxu1 %v1906_v2  ;;  %v666_v13 = vshrl.u32 %v269_v6, 16  ;;  %v2083_v14 = vpack.i.b16 %v270_v7, %v270_v7  ;;  %v1016_v18 = vshrl.u32 %v270_v7, 16  ;;  %vm1425_vm2 = vcmask 523264   ;;  %s1603_s29 = sadd.s32 (%p2042_p5), %s1948_s20, %s1799_s18 }
  0x17   : > { %v2076_v9 = vsub.s32 0, %v275_v3  ;;  %v2078_v11 = vsub.s32 1, %v275_v3  ;;  %s232_s12 = scalar_lea.vmem %s2764_s0, %s1848_s17  ;;  %v315_v16 = vpack.i.b16 %v314_v10, %v314_v10  ;;  %s1800_s11 = sshll.u32 (%p2042_p5), %s1603_s29, 3 }
  0x18   : > { %s2085_s13 = scalar_lea.vmem %s232_s12, %s1803_s14  ;;  %v667_v21 = vpack.i.b16 %v666_v13, %v666_v13  ;;  %v2101_v27 = vpack.i.b16 %v1016_v18, %v1016_v18  ;;  %s1605_s15 = scalar_lea.vmem (%p2042_p5), %s2769_s5, %s1800_s11 }
  0x19   : > { %1819 = vmatpush3.bf16.msra.mxu0 %v1906_v2  ;;  %v277_v15 = vrot.slane %v272_v8, %v2076_v9  ;;  %v473_v17 = vrot.slane %v272_v8, %v2078_v11  ;;  %1845 = vmatpush3.bf16.msra.mxu1 %v1906_v2  ;;  %v629_v20 = vrot.slane %v624_v12, %v2076_v9  ;;  %v238_v28 = vld [vmem:[%s2085_s13] sm:$0xf]  ;;  %v239_v29 = vld [vmem:[%s2085_s13 + $0x4] sm:$0xf]  ;;  %v240_v34 = vld [vmem:[%s2085_s13 + $0x8] sm:$0x1] }
  0x1a   : > { %1820 = vmatprep.subr.bf16.mxu0 %v1907_v4  ;;  %v824_v22 = vrot.slane %v624_v12, %v2078_v11  ;;  %v979_v23 = vrot.slane %v2083_v14, %v2076_v9  ;;  %v320_v25 = vrot.slane %v315_v16, %v2076_v9  ;;  %1842 = vmatprep.subr.bf16.mxu1 %v1907_v4  ;;  %v2114_v35 = vld [vmem:[%s2085_s13 + $0xc] sm:$0xf]  ;;  %v2117_v36 = vld [vmem:[%s2085_s13 + $0x10] sm:$0xf]  ;;  %v2134_v57 = vld [vmem:[%s2085_s13 + $0x14] sm:$0x1] }
  0x1b   : > { %v2096_v24 = vcombine.low %v277_v15, %v277_v15  ;;  %v2099_v26 = vcombine.low %v473_v17, %v473_v17  ;;  %v2105_v30 = vcombine.low %v629_v20, %v629_v20  ;;  %v672_v31 = vrot.slane %v667_v21, %v2076_v9  ;;  %v2155_v21 = vld [vmem:[%s2085_s13 + $0x18] sm:$0xf] }
  0x1c   : > { %v2108_v32 = vcombine.low %v824_v22, %v824_v22  ;;  %v2110_v33 = vcombine.low %v979_v23, %v979_v23  ;;  %v2121_v39 = vcombine.low %v320_v25, %v320_v25 }
  0x1d   : > { %1821 = vmatpush3.bf16.msra.mxu0 %v1907_v4  ;;  %v282_v37 = vmul.bf16 %v2096_v24, %v238_v28  ;;  %v283_v38 = vmul.bf16 %v2096_v24, %v239_v29  ;;  %v478_v40 = vmul.bf16 %v2099_v26, %v238_v28  ;;  %v479_v41 = vmul.bf16 %v2099_v26, %v239_v29 }
  0x1e   : > { %1822 = vmatprep.subr.bf16.mxu0 %v1908_v19  ;;  %v480_v42 = vmul.bf16 %v2099_v26, %v240_v34  ;;  %v634_v43 = vmul.bf16 %v2105_v30, %v2114_v35  ;;  %v635_v44 = vmul.bf16 %v2105_v30, %v2117_v36  ;;  %v325_v47 = vmul.bf16 %v2121_v39, %v238_v28 }
  0x1f   : > { %v298_v45 = vunpack.c.l.bf16 %v282_v37  ;;  %v299_v46 = vunpack.c.l.bf16 %v283_v38  ;;  %v326_v48 = vmul.bf16 %v2121_v39, %v239_v29  ;;  %1846 = vmatpush3.bf16.msra.mxu1 %v1907_v4  ;;  %v327_v49 = vmul.bf16 %v2121_v39, %v240_v34  ;;  %v2158_v29 = vld [vmem:[%s2085_s13 + $0x1c] sm:$0xf] }
  0x20   : > { %v502_v50 = vunpack.c.l.bf16 %v478_v40  ;;  %v503_v51 = vunpack.c.l.bf16 %v479_v41  ;;  %v504_v52 = vunpack.c.l.bf16 %v480_v42  ;;  %1843 = vmatprep.subr.bf16.mxu1 %v1908_v19  ;;  %v349_v53 = vunpack.c.l.bf16 %v325_v47 }
  0x21   : > { %1823 = vmatpush3.bf16.msra.mxu0 %v1908_v19  ;;  %v350_v54 = vunpack.c.l.bf16 %v326_v48  ;;  %v650_v55 = vunpack.c.l.bf16 %v634_v43  ;;  %v651_v56 = vunpack.c.l.bf16 %v635_v44  ;;  %v351_v58 = vunpack.c.l.bf16 %v327_v49  ;;  %v2171_v48 = vld [vmem:[%s2085_s13 + $0x20] sm:$0x1] }
  0x22   : > { %v551_v59 = vrot.slane %v502_v50, 2  ;;  %v552_v60 = vrot.slane %v503_v51, 2  ;;  %v554_v61 = vrot.slane %v504_v52, 2  ;;  %v398_v62 = vrot.slane %v349_v53, 1 }
  0x23   : > { %v399_v63 = vrot.slane %v350_v54, 1  ;;  %v2136_v0 = vcombine.low %v672_v31, %v672_v31  ;;  %v829_v1 = vmul.bf16 %v2108_v32, %v2114_v35  ;;  %1847 = vmatpush3.bf16.msra.mxu1 %v1908_v19  ;;  %v401_v2 = vrot.slane %v351_v58, 1 }
  0x24   : > { %v553_v3 = vsel %vm550_vm0, %v551_v59, %v552_v60  ;;  %v555_v4 = vsel %vm550_vm0, %v552_v60, %v554_v61  ;;  %v830_v5 = vmul.bf16 %v2108_v32, %v2117_v36  ;;  %v831_v15 = vmul.bf16 %v2108_v32, %v2134_v57 }
  0x25   : > { %v400_v6 = vsel %vm397_vm1, %v398_v62, %v399_v63  ;;  %v677_v7 = vmul.bf16 %v2136_v0, %v2114_v35  ;;  %v678_v8 = vmul.bf16 %v2136_v0, %v2117_v36  ;;  %v679_v10 = vmul.bf16 %v2136_v0, %v2134_v57 }
  0x26   : > { %v402_v12 = vsel %vm397_vm1, %v399_v63, %v401_v2  ;;  %v454_v13 = vadd.f32 %v400_v6, %v298_v45  ;;  %v853_v16 = vunpack.c.l.bf16 %v829_v1  ;;  %v854_v23 = vunpack.c.l.bf16 %v830_v5 }
  0x27   : > { %v455_v17 = vadd.f32 %v402_v12, %v299_v46  ;;  %v701_v18 = vunpack.c.l.bf16 %v677_v7  ;;  %v702_v19 = vunpack.c.l.bf16 %v678_v8  ;;  %v703_v20 = vunpack.c.l.bf16 %v679_v10 }
  0x28   : > { %v607_v22 = vadd.f32 %v553_v3, %v454_v13  ;;  %v855_v25 = vunpack.c.l.bf16 %v831_v15  ;;  %v901_v28 = vrot.slane %v853_v16, 2  ;;  %v902_v40 = vrot.slane %v854_v23, 2 }
  0x29   : > { %v608_v31 = vadd.f32 %v555_v4, %v455_v17  ;;  %v749_v34 = vrot.slane %v701_v18, 1  ;;  %v750_v37 = vrot.slane %v702_v19, 1  ;;  %v752_v38 = vrot.slane %v703_v20, 1 }
  0x2a   : > { %v904_v41 = vrot.slane %v855_v25, 2  ;;  %v984_v42 = vmul.bf16 %v2110_v33, %v2155_v21  ;;  %v985_v43 = vmul.bf16 %v2110_v33, %v2158_v29  ;;  %v1022_v46 = vrot.slane %v2101_v27, %v2076_v9 }
  0x2b   : > { %v751_v44 = vsel %vm397_vm1, %v749_v34, %v750_v37  ;;  %v753_v45 = vsel %vm397_vm1, %v750_v37, %v752_v38  ;;  %v1174_v47 = vrot.slane %v2083_v14, %v2078_v11  ;;  %v903_v51 = vsel %vm550_vm0, %v901_v28, %v902_v40 }
  0x2c   : > { %v805_v49 = vadd.f32 %v751_v44, %v650_v55  ;;  %v806_v50 = vadd.f32 %v753_v45, %v651_v56  ;;  %v905_v52 = vsel %vm550_vm0, %v902_v40, %v904_v41  ;;  %v1000_v53 = vunpack.c.l.bf16 %v984_v42  ;;  %v2208_v40 = vld [vmem:[%s2766_s2] ss:$0 sm:$0xff] }
  0x2d   : > { %v2175_v54 = vcombine.low %v1022_v46, %v1022_v46  ;;  %v2177_v58 = vcombine.low %v1174_v47, %v1174_v47  ;;  %v1001_v61 = vunpack.c.l.bf16 %v985_v43  ;;  %v284_v9 = vmul.bf16 %v2096_v24, %v2114_v35 }
  0x2e   : > { %v957_v59 = vadd.f32 %v903_v51, %v805_v49  ;;  %v958_v60 = vadd.f32 %v905_v52, %v806_v50  ;;  %v285_v8 = vmul.bf16 %v2096_v24, %v2117_v36  ;;  %v328_v20 = vmul.bf16 %v2121_v39, %v2114_v35 }
  0x2f   : > { %v1027_v11 = vmul.bf16 %v2175_v54, %v2155_v21  ;;  %v1028_v14 = vmul.bf16 %v2175_v54, %v2158_v29  ;;  %v1029_v27 = vmul.bf16 %v2175_v54, %v2171_v48  ;;  %v1179_v55 = vmul.bf16 %v2177_v58, %v2155_v21 }
  0x30   : > { %v1180_v56 = vmul.bf16 %v2177_v58, %v2158_v29  ;;  %v1181_v62 = vmul.bf16 %v2177_v58, %v2171_v48  ;;  %v1323_v63 = vadd.f32 %v957_v59, %v607_v22  ;;  %v1324_v1 = vadd.f32 %v958_v60, %v608_v31 }
  0x31   : > { %v1051_v2 = vunpack.c.l.bf16 %v1027_v11  ;;  %v1052_v3 = vunpack.c.l.bf16 %v1028_v14  ;;  %v1053_v4 = vunpack.c.l.bf16 %v1029_v27  ;;  %v1203_v5 = vunpack.c.l.bf16 %v1179_v55 }
  0x32   : > { %v1204_v6 = vunpack.c.l.bf16 %v1180_v56  ;;  %v1205_v7 = vunpack.c.l.bf16 %v1181_v62  ;;  %v300_v10 = vunpack.c.l.bf16 %v284_v9  ;;  %v301_v19 = vunpack.c.l.bf16 %v285_v8 }
  0x33   : > { %v1099_v12 = vrot.slane %v1051_v2, 1  ;;  %v1100_v13 = vrot.slane %v1052_v3, 1  ;;  %v1102_v15 = vrot.slane %v1053_v4, 1  ;;  %v1251_v16 = vrot.slane %v1203_v5, 2 }
  0x34   : > { %v1252_v17 = vrot.slane %v1204_v6, 2  ;;  %v1254_v18 = vrot.slane %v1205_v7, 2  ;;  %v329_v25 = vmul.bf16 %v2121_v39, %v2117_v36  ;;  %v330_v28 = vmul.bf16 %v2121_v39, %v2134_v57 }
  0x35   : > { %v1101_v22 = vsel %vm397_vm1, %v1099_v12, %v1100_v13  ;;  %v1103_v23 = vsel %vm397_vm1, %v1100_v13, %v1102_v15  ;;  %v352_v41 = vunpack.c.l.bf16 %v328_v20  ;;  %v481_v44 = vmul.bf16 %v2099_v26, %v2114_v35 }
  0x36   : > { %v1155_v31 = vadd.f32 %v1101_v22, %v1000_v53  ;;  %v1156_v34 = vadd.f32 %v1103_v23, %v1001_v61  ;;  %v1253_v37 = vsel %vm550_vm0, %v1251_v16, %v1252_v17  ;;  %v1255_v38 = vsel %vm550_vm0, %v1252_v17, %v1254_v18  ;;  %v2236_v18 = vld [vmem:[%s2085_s13 + $0x24] sm:$0xf] }
  0x37   : > { %v353_v42 = vunpack.c.l.bf16 %v329_v25  ;;  %v354_v43 = vunpack.c.l.bf16 %v330_v28  ;;  %v482_v47 = vmul.bf16 %v2099_v26, %v2117_v36  ;;  %v483_v49 = vmul.bf16 %v2099_v26, %v2134_v57 }
  0x38   : > { %v1307_v45 = vadd.f32 %v1253_v37, %v1155_v31  ;;  %v1308_v46 = vadd.f32 %v1255_v38, %v1156_v34  ;;  %v403_v50 = vrot.slane %v352_v41, 1  ;;  %v505_v53 = vunpack.c.l.bf16 %v481_v44  ;;  %v2250_v38 = vld [vmem:[%s2085_s13 + $0x2c] sm:$0x1] }
  0x39   : > { %v404_v51 = vrot.slane %v353_v42, 1  ;;  %v406_v52 = vrot.slane %v354_v43, 1  ;;  %v506_v61 = vunpack.c.l.bf16 %v482_v47  ;;  %v507_v9 = vunpack.c.l.bf16 %v483_v49 }
  0x3a   : > { %v1346_v59 = vadd.f32 %v2208_v40, %v1307_v45  ;;  %v1347_v60 = vadd.f32 %v2208_v40, %v1308_v46  ;;  %v556_v14 = vrot.slane %v505_v53, 2  ;;  %v636_v36 = vmul.bf16 %v2105_v30, %v2155_v21 }
  0x3b   : > { %v405_v35 = vsel %vm397_vm1, %v403_v50, %v404_v51  ;;  %v407_v11 = vsel %vm397_vm1, %v404_v51, %v406_v52  ;;  %v557_v62 = vrot.slane %v506_v61, 2  ;;  %v559_v2 = vrot.slane %v507_v9, 2 }
  0x3c   : > { %v1362_v27 = vadd.f32 %v1346_v59, %v1323_v63  ;;  %v1363_v57 = vadd.f32 %v1347_v60, %v1324_v1  ;;  %v456_v55 = vadd.f32 %v405_v35, %v300_v10  ;;  %v457_v56 = vadd.f32 %v407_v11, %v301_v19  ;;  %v2239_v19 = vld [vmem:[%s2085_s13 + $0x28] sm:$0xf] }
  0x3d   : > { %v637_v3 = vmul.bf16 %v2105_v30, %v2158_v29  ;;  %v652_v4 = vunpack.c.l.bf16 %v636_v36  ;;  %v680_v6 = vmul.bf16 %v2136_v0, %v2155_v21  ;;  %v681_v7 = vmul.bf16 %v2136_v0, %v2158_v29 }
  0x3e   : > { %v1378_v5 = vpack.c.bf16 %v1363_v57, %v1362_v27  ;;  %v682_v63 = vmul.bf16 %v2136_v0, %v2171_v48  ;;  %v558_v1 = vsel %vm550_vm0, %v556_v14, %v557_v62  ;;  %v560_v8 = vsel %vm550_vm0, %v557_v62, %v559_v2 }
  0x3f   : > { %v653_v10 = vunpack.c.l.bf16 %v637_v3  ;;  %v832_v12 = vmul.bf16 %v2108_v32, %v2155_v21  ;;  %v609_v13 = vadd.f32 %v558_v1, %v456_v55  ;;  %v610_v15 = vadd.f32 %v560_v8, %v457_v56 }
  0x40   : > { %1824 = vmatprep.mubr.msk.bf16.mxu0 %vm1425_vm2, %v1378_v5  ;;  %v704_v16 = vunpack.c.l.bf16 %v680_v6  ;;  %v705_v17 = vunpack.c.l.bf16 %v681_v7  ;;  %v706_v20 = vunpack.c.l.bf16 %v682_v63  ;;  %v833_v22 = vmul.bf16 %v2108_v32, %v2158_v29 }
  0x41   : > { %v834_v23 = vmul.bf16 %v2108_v32, %v2171_v48  ;;  %v856_v25 = vunpack.c.l.bf16 %v832_v12  ;;  %v986_v34 = vmul.bf16 %v2110_v33, %v2236_v18  ;;  %v987_v37 = vmul.bf16 %v2110_v33, %v2239_v19 }
  0x42   : > { %v754_v28 = vrot.slane %v704_v16, 1  ;;  %v755_v31 = vrot.slane %v705_v17, 1  ;;  %v757_v41 = vrot.slane %v706_v20, 1  ;;  %v857_v42 = vunpack.c.l.bf16 %v833_v22 }
  0x43   : > { %v858_v43 = vunpack.c.l.bf16 %v834_v23  ;;  %v906_v44 = vrot.slane %v856_v25, 2  ;;  %v1002_v46 = vunpack.c.l.bf16 %v986_v34  ;;  %v1003_v47 = vunpack.c.l.bf16 %v987_v37 }
  0x44   : > { %v756_v45 = vsel %vm397_vm1, %v754_v28, %v755_v31  ;;  %v1030_v49 = vmul.bf16 %v2175_v54, %v2236_v18  ;;  %v758_v50 = vsel %vm397_vm1, %v755_v31, %v757_v41  ;;  %v907_v52 = vrot.slane %v857_v42, 2 }
  0x45   : > { %v807_v51 = vadd.f32 %v756_v45, %v652_v4  ;;  %v909_v53 = vrot.slane %v858_v43, 2  ;;  %v808_v59 = vadd.f32 %v758_v50, %v653_v10  ;;  %v1031_v60 = vmul.bf16 %v2175_v54, %v2239_v19 }
  0x46   : > { %v1032_v61 = vmul.bf16 %v2175_v54, %v2250_v38  ;;  %v1054_v9 = vunpack.c.l.bf16 %v1030_v49  ;;  %v908_v35 = vsel %vm550_vm0, %v906_v44, %v907_v52  ;;  %v1182_v14 = vmul.bf16 %v2177_v58, %v2236_v18 }
  0x47   : > { %v910_v11 = vsel %vm550_vm0, %v907_v52, %v909_v53  ;;  %v1183_v36 = vmul.bf16 %v2177_v58, %v2239_v19  ;;  %v959_v27 = vadd.f32 %v908_v35, %v807_v51  ;;  %v1055_v55 = vunpack.c.l.bf16 %v1031_v60 }
  0x48   : > { %v960_v57 = vadd.f32 %v910_v11, %v808_v59  ;;  %v1056_v56 = vunpack.c.l.bf16 %v1032_v61  ;;  %v1104_v62 = vrot.slane %v1054_v9, 1  ;;  %v1184_v2 = vmul.bf16 %v2177_v58, %v2250_v38 }
  0x49   : > { %v1206_v3 = vunpack.c.l.bf16 %v1182_v14  ;;  %v1207_v4 = vunpack.c.l.bf16 %v1183_v36  ;;  %v1105_v5 = vrot.slane %v1055_v55, 1  ;;  %v1325_v7 = vadd.f32 %v959_v27, %v609_v13 }
  0x4a   : > { %v1107_v6 = vrot.slane %v1056_v56, 1  ;;  %v1326_v63 = vadd.f32 %v960_v57, %v610_v15  ;;  %v1208_v1 = vunpack.c.l.bf16 %v1184_v2  ;;  %v286_v12 = vmul.bf16 %v2096_v24, %v2155_v21 }
  0x4b   : > { %v1256_v8 = vrot.slane %v1206_v3, 2  ;;  %v1257_v10 = vrot.slane %v1207_v4, 2  ;;  %v1106_v16 = vsel %vm397_vm1, %v1104_v62, %v1105_v5  ;;  %v287_v20 = vmul.bf16 %v2096_v24, %v2158_v29 }
  0x4c   : > { %v1108_v17 = vsel %vm397_vm1, %v1105_v5, %v1107_v6  ;;  %v331_v22 = vmul.bf16 %v2121_v39, %v2155_v21  ;;  %v1157_v23 = vadd.f32 %v1106_v16, %v1002_v46  ;;  %v1259_v15 = vrot.slane %v1208_v1, 2 }
  0x4d   : > { %v1158_v25 = vadd.f32 %v1108_v17, %v1003_v47  ;;  %v1258_v13 = vsel %vm550_vm0, %v1256_v8, %v1257_v10  ;;  %v302_v28 = vunpack.c.l.bf16 %v286_v12  ;;  %v303_v31 = vunpack.c.l.bf16 %v287_v20  ;;  %v2304_v8 = vld [vmem:[%s2085_s13 + $0x30] sm:$0xf]  ;;  %v2311_v20 = vld [vmem:[%s2085_s13 + $0x34] sm:$0xf] }
  0x4e   : > { %v332_v34 = vmul.bf16 %v2121_v39, %v2158_v29  ;;  %v333_v37 = vmul.bf16 %v2121_v39, %v2171_v48  ;;  %v1260_v41 = vsel %vm550_vm0, %v1257_v10, %v1259_v15  ;;  %v1309_v42 = vadd.f32 %v1258_v13, %v1157_v23 }
  0x4f   : > { %v355_v43 = vunpack.c.l.bf16 %v331_v22  ;;  %v484_v44 = vmul.bf16 %v2099_v26, %v2155_v21  ;;  %v1310_v45 = vadd.f32 %v1260_v41, %v1158_v25  ;;  %v485_v49 = vmul.bf16 %v2099_v26, %v2158_v29 }
  0x50   : > { %v356_v46 = vunpack.c.l.bf16 %v332_v34  ;;  %v357_v47 = vunpack.c.l.bf16 %v333_v37  ;;  %v1348_v50 = vadd.f32 %v2208_v40, %v1309_v42  ;;  %v486_v52 = vmul.bf16 %v2099_v26, %v2171_v48  ;;  %v2322_v37 = vld [vmem:[%s2085_s13 + $0x38] sm:$0x1] }
  0x51   : > { %v408_v51 = vrot.slane %v355_v43, 1  ;;  %v508_v53 = vunpack.c.l.bf16 %v484_v44  ;;  %v1349_v59 = vadd.f32 %v2208_v40, %v1310_v45  ;;  %v509_v9 = vunpack.c.l.bf16 %v485_v49 }
  0x52   : > { %v409_v60 = vrot.slane %v356_v46, 1  ;;  %v411_v61 = vrot.slane %v357_v47, 1  ;;  %v1364_v35 = vadd.f32 %v1348_v50, %v1325_v7  ;;  %v510_v21 = vunpack.c.l.bf16 %v486_v52 }
  0x53   : > { %v561_v11 = vrot.slane %v508_v53, 2  ;;  %v638_v14 = vmul.bf16 %v2105_v30, %v2236_v18  ;;  %v1365_v36 = vadd.f32 %v1349_v59, %v1326_v63  ;;  %v562_v57 = vrot.slane %v509_v9, 2 }
  0x54   : > { %v410_v29 = vsel %vm397_vm1, %v408_v51, %v409_v60  ;;  %v412_v27 = vsel %vm397_vm1, %v409_v60, %v411_v61  ;;  %v564_v56 = vrot.slane %v510_v21, 2  ;;  %v639_v62 = vmul.bf16 %v2105_v30, %v2239_v19 }
  0x55   : > { %v458_v48 = vadd.f32 %v410_v29, %v302_v28  ;;  %v459_v55 = vadd.f32 %v412_v27, %v303_v31  ;;  %v1379_v2 = vpack.c.bf16 %v1365_v36, %v1364_v35  ;;  %v563_v3 = vsel %vm550_vm0, %v561_v11, %v562_v57 }
  0x56   : > { %v654_v4 = vunpack.c.l.bf16 %v638_v14  ;;  %v683_v5 = vmul.bf16 %v2136_v0, %v2236_v18  ;;  %v565_v6 = vsel %vm550_vm0, %v562_v57, %v564_v56  ;;  %v655_v63 = vunpack.c.l.bf16 %v639_v62 }
  0x57   : > { %v611_v7 = vadd.f32 %v563_v3, %v458_v48  ;;  %v684_v1 = vmul.bf16 %v2136_v0, %v2239_v19  ;;  %1825 = vmatmul.mubr.msk.bf16.vlgmr.msra.gmra.mxu0 %vm1425_vm2, %v1379_v2  ;;  %v612_v10 = vadd.f32 %v565_v6, %v459_v55  ;;  %v685_v12 = vmul.bf16 %v2136_v0, %v2250_v38 }
  0x58   : > { %v707_v16 = vunpack.c.l.bf16 %v683_v5  ;;  %v835_v17 = vmul.bf16 %v2108_v32, %v2236_v18  ;;  %v836_v23 = vmul.bf16 %v2108_v32, %v2239_v19  ;;  %v837_v25 = vmul.bf16 %v2108_v32, %v2250_v38 }
  0x59   : > { %v708_v22 = vunpack.c.l.bf16 %v684_v1  ;;  %v988_v13 = vmul.bf16 %v2110_v33, %v2304_v8  ;;  %v709_v15 = vunpack.c.l.bf16 %v685_v12  ;;  %v989_v34 = vmul.bf16 %v2110_v33, %v2311_v20 }
  0x5a   : > { %v759_v28 = vrot.slane %v707_v16, 1  ;;  %v859_v31 = vunpack.c.l.bf16 %v835_v17  ;;  %v860_v42 = vunpack.c.l.bf16 %v836_v23  ;;  %v861_v43 = vunpack.c.l.bf16 %v837_v25 }
  0x5b   : > { %v760_v41 = vrot.slane %v708_v22, 1  ;;  %v1004_v44 = vunpack.c.l.bf16 %v988_v13  ;;  %v762_v45 = vrot.slane %v709_v15, 1  ;;  %v1005_v47 = vunpack.c.l.bf16 %v989_v34 }
  0x5c   : > { %v911_v46 = vrot.slane %v859_v31, 2  ;;  %v1033_v49 = vmul.bf16 %v2175_v54, %v2304_v8  ;;  %v912_v51 = vrot.slane %v860_v42, 2  ;;  %v914_v52 = vrot.slane %v861_v43, 2 }
  0x5d   : > { %v761_v50 = vsel %vm397_vm1, %v759_v28, %v760_v41  ;;  %v1034_v53 = vmul.bf16 %v2175_v54, %v2311_v20  ;;  %v763_v59 = vsel %vm397_vm1, %v760_v41, %v762_v45  ;;  %v1035_v61 = vmul.bf16 %v2175_v54, %v2322_v37 }
  0x5e   : > { %v809_v60 = vadd.f32 %v761_v50, %v654_v4  ;;  %v1057_v9 = vunpack.c.l.bf16 %v1033_v49  ;;  %v810_v35 = vadd.f32 %v763_v59, %v655_v63  ;;  %v913_v21 = vsel %vm550_vm0, %v911_v46, %v912_v51 }
  0x5f   : > { %v915_v11 = vsel %vm550_vm0, %v912_v51, %v914_v52  ;;  %v1058_v14 = vunpack.c.l.bf16 %v1034_v53  ;;  %v1059_v29 = vunpack.c.l.bf16 %v1035_v61  ;;  %v1185_v57 = vmul.bf16 %v2177_v58, %v2304_v8 }
  0x60   : > { %v961_v36 = vadd.f32 %v913_v21, %v809_v60  ;;  %v1109_v27 = vrot.slane %v1057_v9, 1  ;;  %v962_v48 = vadd.f32 %v915_v11, %v810_v35  ;;  %v1186_v56 = vmul.bf16 %v2177_v58, %v2311_v20 }
  0x61   : > { %v1110_v55 = vrot.slane %v1058_v14, 1  ;;  %v1187_v62 = vmul.bf16 %v2177_v58, %v2322_v37  ;;  %v1112_v2 = vrot.slane %v1059_v29, 1  ;;  %v1209_v3 = vunpack.c.l.bf16 %v1185_v57 }
  0x62   : > { %v1327_v4 = vadd.f32 %v961_v36, %v611_v7  ;;  %v288_v5 = vmul.bf16 %v2096_v24, %v2236_v18  ;;  %v1210_v63 = vunpack.c.l.bf16 %v1186_v56  ;;  %v1328_v12 = vadd.f32 %v962_v48, %v612_v10 }
  0x63   : > { %v1111_v6 = vsel %vm397_vm1, %v1109_v27, %v1110_v55  ;;  %v1211_v1 = vunpack.c.l.bf16 %v1187_v62  ;;  %v1113_v16 = vsel %vm397_vm1, %v1110_v55, %v1112_v2  ;;  %v1261_v22 = vrot.slane %v1209_v3, 2 }
  0x64   : > { %v1159_v17 = vadd.f32 %v1111_v6, %v1004_v44  ;;  %v289_v23 = vmul.bf16 %v2096_v24, %v2239_v19  ;;  %v1160_v25 = vadd.f32 %v1113_v16, %v1005_v47  ;;  %v1262_v13 = vrot.slane %v1210_v63, 2 }
  0x65   : > { %v1264_v15 = vrot.slane %v1211_v1, 2  ;;  %v304_v28 = vunpack.c.l.bf16 %v288_v5  ;;  %v334_v31 = vmul.bf16 %v2121_v39, %v2236_v18  ;;  %v335_v34 = vmul.bf16 %v2121_v39, %v2239_v19 }
  0x66   : > { %v305_v7 = vunpack.c.l.bf16 %v289_v23  ;;  %v336_v10 = vmul.bf16 %v2121_v39, %v2250_v38  ;;  %v1263_v41 = vsel %vm550_vm0, %v1261_v22, %v1262_v13  ;;  %v487_v43 = vmul.bf16 %v2099_v26, %v2236_v18  ;;  %v2383_v22 = vld [vmem:[%s2085_s13 + $0x40] sm:$0xf] }
  0x67   : > { %v1265_v42 = vsel %vm550_vm0, %v1262_v13, %v1264_v15  ;;  %v488_v44 = vmul.bf16 %v2099_v26, %v2239_v19  ;;  %v1311_v45 = vadd.f32 %v1263_v41, %v1159_v17  ;;  %v358_v47 = vunpack.c.l.bf16 %v334_v31  ;;  %v2380_v17 = vld [vmem:[%s2085_s13 + $0x3c] sm:$0xf] }
  0x68   : > { %v1312_v46 = vadd.f32 %v1265_v42, %v1160_v25  ;;  %v359_v49 = vunpack.c.l.bf16 %v335_v34  ;;  %v360_v50 = vunpack.c.l.bf16 %v336_v10  ;;  %v489_v51 = vmul.bf16 %v2099_v26, %v2250_v38  ;;  %v2394_v10 = vld [vmem:[%s2085_s13 + $0x44] sm:$0x1] }
  0x69   : > { %v511_v52 = vunpack.c.l.bf16 %v487_v43  ;;  %v512_v53 = vunpack.c.l.bf16 %v488_v44  ;;  %v1350_v59 = vadd.f32 %v2208_v40, %v1311_v45  ;;  %v413_v61 = vrot.slane %v358_v47, 1 }
  0x6a   : > { %v1351_v60 = vadd.f32 %v2208_v40, %v1312_v46  ;;  %v414_v9 = vrot.slane %v359_v49, 1  ;;  %v416_v18 = vrot.slane %v360_v50, 1  ;;  %v513_v35 = vunpack.c.l.bf16 %v489_v51 }
  0x6b   : > { %v566_v21 = vrot.slane %v511_v52, 2  ;;  %v567_v19 = vrot.slane %v512_v53, 2  ;;  %v1366_v11 = vadd.f32 %v1350_v59, %v1327_v4  ;;  %v640_v29 = vmul.bf16 %v2105_v30, %v2304_v8 }
  0x6c   : > { %v1367_v14 = vadd.f32 %v1351_v60, %v1328_v12  ;;  %v415_v36 = vsel %vm397_vm1, %v413_v61, %v414_v9  ;;  %v417_v38 = vsel %vm397_vm1, %v414_v9, %v416_v18  ;;  %v569_v48 = vrot.slane %v513_v35, 2 }
  0x6d   : > { %v460_v27 = vadd.f32 %v415_v36, %v304_v28  ;;  %v568_v57 = vsel %vm550_vm0, %v566_v21, %v567_v19  ;;  %v461_v56 = vadd.f32 %v417_v38, %v305_v7  ;;  %v641_v62 = vmul.bf16 %v2105_v30, %v2311_v20 }
  0x6e   : > { %v1380_v55 = vpack.c.bf16 %v1367_v14, %v1366_v11  ;;  %v656_v2 = vunpack.c.l.bf16 %v640_v29  ;;  %v570_v3 = vsel %vm550_vm0, %v567_v19, %v569_v48  ;;  %v686_v5 = vmul.bf16 %v2136_v0, %v2304_v8 }
  0x6f   : > { %v613_v4 = vadd.f32 %v568_v57, %v460_v27  ;;  %v687_v6 = vmul.bf16 %v2136_v0, %v2311_v20  ;;  %v614_v63 = vadd.f32 %v570_v3, %v461_v56  ;;  %v657_v1 = vunpack.c.l.bf16 %v641_v62 }
  0x70   : > { %1828 = vmatprep.mubr.msk.bf16.mxu0 %vm1425_vm2, %v1380_v55  ;;  %v688_v12 = vmul.bf16 %v2136_v0, %v2322_v37  ;;  %v838_v16 = vmul.bf16 %v2108_v32, %v2304_v8  ;;  %v710_v23 = vunpack.c.l.bf16 %v686_v5  ;;  %v839_v13 = vmul.bf16 %v2108_v32, %v2311_v20 }
  0x71   : > { %v711_v25 = vunpack.c.l.bf16 %v687_v6  ;;  %v840_v15 = vmul.bf16 %v2108_v32, %v2322_v37  ;;  %v990_v31 = vmul.bf16 %v2110_v33, %v2380_v17  ;;  %v991_v34 = vmul.bf16 %v2110_v33, %v2383_v22 }
  0x72   : > { %v712_v28 = vunpack.c.l.bf16 %v688_v12  ;;  %v862_v7 = vunpack.c.l.bf16 %v838_v16  ;;  %v764_v41 = vrot.slane %v710_v23, 1  ;;  %v863_v43 = vunpack.c.l.bf16 %v839_v13 }
  0x73   : > { %v765_v42 = vrot.slane %v711_v25, 1  ;;  %v864_v44 = vunpack.c.l.bf16 %v840_v15  ;;  %v1006_v47 = vunpack.c.l.bf16 %v990_v31  ;;  %v1007_v49 = vunpack.c.l.bf16 %v991_v34 }
  0x74   : > { %v767_v45 = vrot.slane %v712_v28, 1  ;;  %v916_v46 = vrot.slane %v862_v7, 2  ;;  %v917_v51 = vrot.slane %v863_v43, 2  ;;  %v1036_v53 = vmul.bf16 %v2175_v54, %v2380_v17 }
  0x75   : > { %v766_v50 = vsel %vm397_vm1, %v764_v41, %v765_v42  ;;  %v919_v52 = vrot.slane %v864_v44, 2  ;;  %v1037_v61 = vmul.bf16 %v2175_v54, %v2383_v22  ;;  %v1038_v9 = vmul.bf16 %v2175_v54, %v2394_v10 }
  0x76   : > { %v768_v59 = vsel %vm397_vm1, %v765_v42, %v767_v45  ;;  %v811_v60 = vadd.f32 %v766_v50, %v656_v2  ;;  %v918_v35 = vsel %vm550_vm0, %v916_v46, %v917_v51  ;;  %v1060_v19 = vunpack.c.l.bf16 %v1036_v53 }
  0x77   : > { %v812_v18 = vadd.f32 %v768_v59, %v657_v1  ;;  %v920_v21 = vsel %vm550_vm0, %v917_v51, %v919_v52  ;;  %v1061_v14 = vunpack.c.l.bf16 %v1037_v61  ;;  %v1062_v36 = vunpack.c.l.bf16 %v1038_v9 }
  0x78   : > { %v963_v11 = vadd.f32 %v918_v35, %v811_v60  ;;  %v1188_v29 = vmul.bf16 %v2177_v58, %v2380_v17  ;;  %v1114_v27 = vrot.slane %v1060_v19, 1  ;;  %v1189_v57 = vmul.bf16 %v2177_v58, %v2383_v22 }
  0x79   : > { %v964_v38 = vadd.f32 %v920_v21, %v812_v18  ;;  %v1190_v48 = vmul.bf16 %v2177_v58, %v2394_v10  ;;  %v1115_v55 = vrot.slane %v1061_v14, 1  ;;  %v1117_v56 = vrot.slane %v1062_v36, 1 }
  0x7a   : > { %v1212_v62 = vunpack.c.l.bf16 %v1188_v29  ;;  %v1329_v2 = vadd.f32 %v963_v11, %v613_v4  ;;  %v1213_v3 = vunpack.c.l.bf16 %v1189_v57  ;;  %v290_v1 = vmul.bf16 %v2096_v24, %v2304_v8 }
  0x7b   : > { %v1214_v5 = vunpack.c.l.bf16 %v1190_v48  ;;  %v1330_v6 = vadd.f32 %v964_v38, %v614_v63  ;;  %v1116_v12 = vsel %vm397_vm1, %v1114_v27, %v1115_v55  ;;  %v1118_v16 = vsel %vm397_vm1, %v1115_v55, %v1117_v56 }
  0x7c   : > { %v1266_v23 = vrot.slane %v1212_v62, 2  ;;  %v291_v25 = vmul.bf16 %v2096_v24, %v2311_v20  ;;  %v1161_v13 = vadd.f32 %v1116_v12, %v1006_v47  ;;  %v1162_v15 = vadd.f32 %v1118_v16, %v1007_v49  ;;  %v2450_v16 = vld [vmem:[%s2085_s13 + $0x48] sm:$0xf] }
  0x7d   : > { %v1267_v28 = vrot.slane %v1213_v3, 2  ;;  %v1269_v7 = vrot.slane %v1214_v5, 2  ;;  %v306_v31 = vunpack.c.l.bf16 %v290_v1  ;;  %v337_v63 = vmul.bf16 %v2121_v39, %v2304_v8 }
  0x7e   : > { %v307_v4 = vunpack.c.l.bf16 %v291_v25  ;;  %v338_v34 = vmul.bf16 %v2121_v39, %v2311_v20  ;;  %v339_v43 = vmul.bf16 %v2121_v39, %v2322_v37  ;;  %v490_v44 = vmul.bf16 %v2099_v26, %v2304_v8 }
  0x7f   : > { %v1268_v41 = vsel %vm550_vm0, %v1266_v23, %v1267_v28  ;;  %v1270_v42 = vsel %vm550_vm0, %v1267_v28, %v1269_v7  ;;  %v361_v47 = vunpack.c.l.bf16 %v337_v63  ;;  %v491_v51 = vmul.bf16 %v2099_v26, %v2311_v20  ;;  %v2453_v23 = vld [vmem:[%s2085_s13 + $0x4c] sm:$0xf] }
  0x80   : > { %v1313_v45 = vadd.f32 %v1268_v41, %v1161_v13  ;;  %v1314_v46 = vadd.f32 %v1270_v42, %v1162_v15  ;;  %v362_v49 = vunpack.c.l.bf16 %v338_v34  ;;  %v363_v50 = vunpack.c.l.bf16 %v339_v43 }
  0x81   : > { %v492_v52 = vmul.bf16 %v2099_v26, %v2322_v37  ;;  %v514_v53 = vunpack.c.l.bf16 %v490_v44  ;;  %v418_v61 = vrot.slane %v361_v47, 1  ;;  %v515_v8 = vunpack.c.l.bf16 %v491_v51  ;;  %v2466_v44 = vld [vmem:[%s2085_s13 + $0x50] sm:$0x1] }
  0x82   : > { %v1352_v59 = vadd.f32 %v2208_v40, %v1313_v45  ;;  %v1353_v60 = vadd.f32 %v2208_v40, %v1314_v46  ;;  %v419_v9 = vrot.slane %v362_v49, 1  ;;  %v421_v18 = vrot.slane %v363_v50, 1 }
  0x83   : > { %v516_v35 = vunpack.c.l.bf16 %v492_v52  ;;  %v571_v21 = vrot.slane %v514_v53, 2  ;;  %v642_v20 = vmul.bf16 %v2105_v30, %v2380_v17  ;;  %v572_v29 = vrot.slane %v515_v8, 2 }
  0x84   : > { %v1368_v19 = vadd.f32 %v1352_v59, %v1329_v2  ;;  %v1369_v11 = vadd.f32 %v1353_v60, %v1330_v6  ;;  %v420_v14 = vsel %vm397_vm1, %v418_v61, %v419_v9  ;;  %v422_v37 = vsel %vm397_vm1, %v419_v9, %v421_v18 }
  0x85   : > { %v462_v36 = vadd.f32 %v420_v14, %v306_v31  ;;  %v574_v38 = vrot.slane %v516_v35, 2  ;;  %v463_v57 = vadd.f32 %v422_v37, %v307_v4  ;;  %v643_v48 = vmul.bf16 %v2105_v30, %v2383_v22 }
  0x86   : > { %v1381_v27 = vpack.c.bf16 %v1369_v11, %v1368_v19  ;;  %v658_v55 = vunpack.c.l.bf16 %v642_v20  ;;  %v573_v56 = vsel %vm550_vm0, %v571_v21, %v572_v29  ;;  %v689_v2 = vmul.bf16 %v2136_v0, %v2380_v17 }
  0x87   : > { %v575_v62 = vsel %vm550_vm0, %v572_v29, %v574_v38  ;;  %v690_v3 = vmul.bf16 %v2136_v0, %v2383_v22  ;;  %v615_v5 = vadd.f32 %v573_v56, %v462_v36  ;;  %v659_v1 = vunpack.c.l.bf16 %v643_v48 }
  0x88   : > { %1829 = vmatmul.mubr.msk.bf16.gmra.mxu0 %vm1425_vm2, %v1381_v27  ;;  %v616_v6 = vadd.f32 %v575_v62, %v463_v57  ;;  %v691_v12 = vmul.bf16 %v2136_v0, %v2394_v10  ;;  %v713_v25 = vunpack.c.l.bf16 %v689_v2  ;;  %v841_v15 = vmul.bf16 %v2108_v32, %v2380_v17 }
  0x89   : > { %v714_v13 = vunpack.c.l.bf16 %v690_v3  ;;  %v842_v28 = vmul.bf16 %v2108_v32, %v2383_v22  ;;  %v843_v31 = vmul.bf16 %v2108_v32, %v2394_v10  ;;  %v992_v4 = vmul.bf16 %v2110_v33, %v2450_v16 }
  0x8a   : > { %v715_v7 = vunpack.c.l.bf16 %v691_v12  ;;  %v993_v63 = vmul.bf16 %v2110_v33, %v2453_v23  ;;  %v769_v34 = vrot.slane %v713_v25, 1  ;;  %v865_v42 = vunpack.c.l.bf16 %v841_v15 }
  0x8b   : > { %v770_v41 = vrot.slane %v714_v13, 1  ;;  %v866_v43 = vunpack.c.l.bf16 %v842_v28  ;;  %v867_v46 = vunpack.c.l.bf16 %v843_v31  ;;  %v1008_v47 = vunpack.c.l.bf16 %v992_v4 }
  0x8c   : > { %v772_v45 = vrot.slane %v715_v7, 1  ;;  %v1009_v49 = vunpack.c.l.bf16 %v993_v63  ;;  %v921_v51 = vrot.slane %v865_v42, 2  ;;  %v1039_v53 = vmul.bf16 %v2175_v54, %v2450_v16 }
  0x8d   : > { %v771_v50 = vsel %vm397_vm1, %v769_v34, %v770_v41  ;;  %v922_v52 = vrot.slane %v866_v43, 2  ;;  %v924_v61 = vrot.slane %v867_v46, 2  ;;  %v1040_v9 = vmul.bf16 %v2175_v54, %v2453_v23 }
  0x8e   : > { %v773_v59 = vsel %vm397_vm1, %v770_v41, %v772_v45  ;;  %v813_v60 = vadd.f32 %v771_v50, %v658_v55  ;;  %v1041_v35 = vmul.bf16 %v2175_v54, %v2466_v44  ;;  %v1063_v21 = vunpack.c.l.bf16 %v1039_v53 }
  0x8f   : > { %v814_v18 = vadd.f32 %v773_v59, %v659_v1  ;;  %v923_v8 = vsel %vm550_vm0, %v921_v51, %v922_v52  ;;  %v925_v19 = vsel %vm550_vm0, %v922_v52, %v924_v61  ;;  %v1064_v14 = vunpack.c.l.bf16 %v1040_v9 }
  0x90   : > { %v965_v11 = vadd.f32 %v923_v8, %v813_v60  ;;  %v1191_v20 = vmul.bf16 %v2177_v58, %v2450_v16  ;;  %v1065_v36 = vunpack.c.l.bf16 %v1041_v35  ;;  %v1119_v29 = vrot.slane %v1063_v21, 1 }
  0x91   : > { %v966_v37 = vadd.f32 %v925_v19, %v814_v18  ;;  %v1192_v38 = vmul.bf16 %v2177_v58, %v2453_v23  ;;  %v1120_v27 = vrot.slane %v1064_v14, 1  ;;  %v1193_v57 = vmul.bf16 %v2177_v58, %v2466_v44 }
  0x92   : > { %v1215_v48 = vunpack.c.l.bf16 %v1191_v20  ;;  %v1331_v55 = vadd.f32 %v965_v11, %v615_v5  ;;  %v1122_v56 = vrot.slane %v1065_v36, 1  ;;  %v292_v3 = vmul.bf16 %v2096_v24, %v2380_v17 }
  0x93   : > { %v1216_v62 = vunpack.c.l.bf16 %v1192_v38  ;;  %v1332_v2 = vadd.f32 %v966_v37, %v616_v6  ;;  %v1121_v1 = vsel %vm397_vm1, %v1119_v29, %v1120_v27  ;;  %v1217_v12 = vunpack.c.l.bf16 %v1193_v57 }
  0x94   : > { %v1271_v25 = vrot.slane %v1215_v48, 2  ;;  %v293_v13 = vmul.bf16 %v2096_v24, %v2383_v22  ;;  %v1123_v15 = vsel %vm397_vm1, %v1120_v27, %v1122_v56  ;;  %v1163_v28 = vadd.f32 %v1121_v1, %v1008_v47  ;;  %v2520_v1 = vld [vmem:[%s2085_s13 + $0x54] sm:$0xf] }
  0x95   : > { %v1272_v7 = vrot.slane %v1216_v62, 2  ;;  %v308_v31 = vunpack.c.l.bf16 %v292_v3  ;;  %v1164_v4 = vadd.f32 %v1123_v15, %v1009_v49  ;;  %v1274_v5 = vrot.slane %v1217_v12, 2  ;;  %v2523_v12 = vld [vmem:[%s2085_s13 + $0x58] sm:$0xf] }
  0x96   : > { %v309_v63 = vunpack.c.l.bf16 %v293_v13  ;;  %v340_v6 = vmul.bf16 %v2121_v39, %v2380_v17  ;;  %v341_v41 = vmul.bf16 %v2121_v39, %v2383_v22  ;;  %v342_v42 = vmul.bf16 %v2121_v39, %v2394_v10 }
  0x97   : > { %v1273_v34 = vsel %vm550_vm0, %v1271_v25, %v1272_v7  ;;  %v493_v43 = vmul.bf16 %v2099_v26, %v2380_v17  ;;  %v1275_v45 = vsel %vm550_vm0, %v1272_v7, %v1274_v5  ;;  %v494_v49 = vmul.bf16 %v2099_v26, %v2383_v22 }
  0x98   : > { %v1315_v46 = vadd.f32 %v1273_v34, %v1163_v28  ;;  %v364_v47 = vunpack.c.l.bf16 %v340_v6  ;;  %v1316_v50 = vadd.f32 %v1275_v45, %v1164_v4  ;;  %v365_v51 = vunpack.c.l.bf16 %v341_v41 }
  0x99   : > { %v366_v52 = vunpack.c.l.bf16 %v342_v42  ;;  %v495_v53 = vmul.bf16 %v2099_v26, %v2394_v10  ;;  %v517_v61 = vunpack.c.l.bf16 %v493_v43  ;;  %v518_v9 = vunpack.c.l.bf16 %v494_v49 }
  0x9a   : > { %v1354_v59 = vadd.f32 %v2208_v40, %v1315_v46  ;;  %v423_v60 = vrot.slane %v364_v47, 1  ;;  %v1355_v17 = vadd.f32 %v2208_v40, %v1316_v50  ;;  %v424_v18 = vrot.slane %v365_v51, 1 }
  0x9b   : > { %v426_v8 = vrot.slane %v366_v52, 1  ;;  %v519_v35 = vunpack.c.l.bf16 %v495_v53  ;;  %v576_v19 = vrot.slane %v517_v61, 2  ;;  %v577_v11 = vrot.slane %v518_v9, 2 }
  0x9c   : > { %v1370_v21 = vadd.f32 %v1354_v59, %v1331_v55  ;;  %v644_v22 = vmul.bf16 %v2105_v30, %v2450_v16  ;;  %v1371_v14 = vadd.f32 %v1355_v17, %v1332_v2  ;;  %v425_v20 = vsel %vm397_vm1, %v423_v60, %v424_v18 }
  0x9d   : > { %v427_v10 = vsel %vm397_vm1, %v424_v18, %v426_v8  ;;  %v579_v37 = vrot.slane %v519_v35, 2  ;;  %v464_v36 = vadd.f32 %v425_v20, %v308_v31  ;;  %v578_v40 = vsel %vm550_vm0, %v576_v19, %v577_v11 }
  0x9e   : > { %v465_v29 = vadd.f32 %v427_v10, %v309_v63  ;;  %v645_v38 = vmul.bf16 %v2105_v30, %v2453_v23  ;;  %v1382_v27 = vpack.c.bf16 %v1371_v14, %v1370_v21  ;;  %v660_v48 = vunpack.c.l.bf16 %v644_v22  ;;  %v2538_v63 = vld [vmem:[%s2085_s13 + $0x5c] sm:$0x1] }
  0x9f   : > { %v580_v57 = vsel %vm550_vm0, %v577_v11, %v579_v37  ;;  %v692_v55 = vmul.bf16 %v2136_v0, %v2450_v16  ;;  %v617_v56 = vadd.f32 %v578_v40, %v464_v36  ;;  %v693_v3 = vmul.bf16 %v2136_v0, %v2453_v23 }
  0xa0   : > { %v618_v62 = vadd.f32 %v580_v57, %v465_v29  ;;  %v661_v2 = vunpack.c.l.bf16 %v645_v38  ;;  %1832 = vmatprep.mubr.msk.bf16.mxu1 %vm1425_vm2, %v1382_v27  ;;  %v694_v25 = vmul.bf16 %v2136_v0, %v2466_v44  ;;  %v844_v15 = vmul.bf16 %v2108_v32, %v2450_v16 }
  0xa1   : > { %v716_v13 = vunpack.c.l.bf16 %v692_v55  ;;  %v845_v28 = vmul.bf16 %v2108_v32, %v2453_v23  ;;  %v717_v7 = vunpack.c.l.bf16 %v693_v3  ;;  %v846_v31 = vmul.bf16 %v2108_v32, %v2466_v44 }
  0xa2   : > { %v994_v4 = vmul.bf16 %v2110_v33, %v2520_v1  ;;  %v995_v5 = vmul.bf16 %v2110_v33, %v2523_v12  ;;  %v718_v6 = vunpack.c.l.bf16 %v694_v25  ;;  %v868_v41 = vunpack.c.l.bf16 %v844_v15 }
  0xa3   : > { %v774_v34 = vrot.slane %v716_v13, 1  ;;  %v869_v42 = vunpack.c.l.bf16 %v845_v28  ;;  %v775_v43 = vrot.slane %v717_v7, 1  ;;  %v870_v45 = vunpack.c.l.bf16 %v846_v31 }
  0xa4   : > { %v1010_v46 = vunpack.c.l.bf16 %v994_v4  ;;  %v1011_v47 = vunpack.c.l.bf16 %v995_v5  ;;  %v777_v49 = vrot.slane %v718_v6, 1  ;;  %v926_v50 = vrot.slane %v868_v41, 2 }
  0xa5   : > { %v927_v51 = vrot.slane %v869_v42, 2  ;;  %v1042_v52 = vmul.bf16 %v2175_v54, %v2520_v1  ;;  %v776_v53 = vsel %vm397_vm1, %v774_v34, %v775_v43  ;;  %v929_v59 = vrot.slane %v870_v45, 2 }
  0xa6   : > { %v1043_v60 = vmul.bf16 %v2175_v54, %v2523_v12  ;;  %v1044_v61 = vmul.bf16 %v2175_v54, %v2538_v63  ;;  %v778_v9 = vsel %vm397_vm1, %v775_v43, %v777_v49  ;;  %v815_v17 = vadd.f32 %v776_v53, %v660_v48 }
  0xa7   : > { %v928_v18 = vsel %vm550_vm0, %v926_v50, %v927_v51  ;;  %v1066_v8 = vunpack.c.l.bf16 %v1042_v52  ;;  %v816_v35 = vadd.f32 %v778_v9, %v661_v2  ;;  %v930_v21 = vsel %vm550_vm0, %v927_v51, %v929_v59  ;;  %v2577_v52 = vld [vmem:[%s2766_s2] ss:$0 sm:$0xff] }
  0xa8   : > { %v1067_v19 = vunpack.c.l.bf16 %v1043_v60  ;;  %v1068_v11 = vunpack.c.l.bf16 %v1044_v61  ;;  %v967_v22 = vadd.f32 %v928_v18, %v815_v17  ;;  %v1194_v20 = vmul.bf16 %v2177_v58, %v2520_v1 }
  0xa9   : > { %v1124_v14 = vrot.slane %v1066_v8, 1  ;;  %v1195_v10 = vmul.bf16 %v2177_v58, %v2523_v12  ;;  %v968_v37 = vadd.f32 %v930_v21, %v816_v35  ;;  %v1196_v40 = vmul.bf16 %v2177_v58, %v2538_v63 }
  0xaa   : > { %v1125_v36 = vrot.slane %v1067_v19, 1  ;;  %v1127_v29 = vrot.slane %v1068_v11, 1  ;;  %v1218_v38 = vunpack.c.l.bf16 %v1194_v20  ;;  %v1333_v57 = vadd.f32 %v967_v22, %v617_v56 }
  0xab   : > { %v1219_v27 = vunpack.c.l.bf16 %v1195_v10  ;;  %v294_v48 = vmul.bf16 %v2096_v24, %v2450_v16  ;;  %v1220_v3 = vunpack.c.l.bf16 %v1196_v40  ;;  %v1334_v25 = vadd.f32 %v968_v37, %v618_v62 }
  0xac   : > { %v1126_v55 = vsel %vm397_vm1, %v1124_v14, %v1125_v36  ;;  %v1128_v2 = vsel %vm397_vm1, %v1125_v36, %v1127_v29  ;;  %v1276_v28 = vrot.slane %v1218_v38, 2  ;;  %v295_v4 = vmul.bf16 %v2096_v24, %v2453_v23 }
  0xad   : > { %v1165_v13 = vadd.f32 %v1126_v55, %v1010_v46  ;;  %v1166_v15 = vadd.f32 %v1128_v2, %v1011_v47  ;;  %v1277_v7 = vrot.slane %v1219_v27, 2  ;;  %v1279_v31 = vrot.slane %v1220_v3, 2  ;;  %v2597_v2 = vld [vmem:[%s2085_s13 + $0x60] sm:$0xf] }
  0xae   : > { %v310_v5 = vunpack.c.l.bf16 %v294_v48  ;;  %v343_v56 = vmul.bf16 %v2121_v39, %v2450_v16  ;;  %v344_v34 = vmul.bf16 %v2121_v39, %v2453_v23  ;;  %v345_v62 = vmul.bf16 %v2121_v39, %v2466_v44 }
  0xaf   : > { %v1278_v6 = vsel %vm550_vm0, %v1276_v28, %v1277_v7  ;;  %v496_v41 = vmul.bf16 %v2099_v26, %v2450_v16  ;;  %v1280_v42 = vsel %vm550_vm0, %v1277_v7, %v1279_v31  ;;  %v311_v45 = vunpack.c.l.bf16 %v295_v4  ;;  %v2604_v28 = vld [vmem:[%s2085_s13 + $0x64] sm:$0xf] }
  0xb0   : > { %v1317_v43 = vadd.f32 %v1278_v6, %v1165_v13  ;;  %v367_v46 = vunpack.c.l.bf16 %v343_v56  ;;  %v1318_v47 = vadd.f32 %v1280_v42, %v1166_v15  ;;  %v368_v49 = vunpack.c.l.bf16 %v344_v34 }
  0xb1   : > { %v369_v50 = vunpack.c.l.bf16 %v345_v62  ;;  %v497_v51 = vmul.bf16 %v2099_v26, %v2453_v23  ;;  %v498_v16 = vmul.bf16 %v2099_v26, %v2466_v44  ;;  %v520_v60 = vunpack.c.l.bf16 %v496_v41  ;;  %v2615_v41 = vld [vmem:[%s2085_s13 + $0x68] sm:$0x1] }
  0xb2   : > { %v1356_v53 = vadd.f32 %v2577_v52, %v1317_v43  ;;  %v428_v59 = vrot.slane %v367_v46, 1  ;;  %v1357_v61 = vadd.f32 %v2577_v52, %v1318_v47  ;;  %v429_v9 = vrot.slane %v368_v49, 1 }
  0xb3   : > { %v431_v17 = vrot.slane %v369_v50, 1  ;;  %v521_v18 = vunpack.c.l.bf16 %v497_v51  ;;  %v522_v35 = vunpack.c.l.bf16 %v498_v16  ;;  %v581_v23 = vrot.slane %v520_v60, 2 }
  0xb4   : > { %v1372_v8 = vadd.f32 %v1356_v53, %v1333_v57  ;;  %v646_v21 = vmul.bf16 %v2105_v30, %v2520_v1  ;;  %v1373_v19 = vadd.f32 %v1357_v61, %v1334_v25  ;;  %v430_v11 = vsel %vm397_vm1, %v428_v59, %v429_v9 }
  0xb5   : > { %v432_v22 = vsel %vm397_vm1, %v429_v9, %v431_v17  ;;  %v582_v14 = vrot.slane %v521_v18, 2  ;;  %v466_v44 = vadd.f32 %v430_v11, %v310_v5  ;;  %v584_v10 = vrot.slane %v522_v35, 2 }
  0xb6   : > { %v467_v20 = vadd.f32 %v432_v22, %v311_v45  ;;  %v647_v37 = vmul.bf16 %v2105_v30, %v2523_v12  ;;  %v1383_v36 = vpack.c.bf16 %v1373_v19, %v1372_v8  ;;  %v662_v40 = vunpack.c.l.bf16 %v646_v21 }
  0xb7   : > { %v583_v29 = vsel %vm550_vm0, %v581_v23, %v582_v14  ;;  %v695_v38 = vmul.bf16 %v2136_v0, %v2520_v1  ;;  %v585_v27 = vsel %vm550_vm0, %v582_v14, %v584_v10  ;;  %v696_v55 = vmul.bf16 %v2136_v0, %v2523_v12 }
  0xb8   : > { %v619_v57 = vadd.f32 %v583_v29, %v466_v44  ;;  %v663_v48 = vunpack.c.l.bf16 %v647_v37  ;;  %1833 = vmatmul.mubr.msk.bf16.vlgmr.msra.gmra.mxu1 %vm1425_vm2, %v1383_v36  ;;  %v620_v3 = vadd.f32 %v585_v27, %v467_v20  ;;  %v697_v25 = vmul.bf16 %v2136_v0, %v2538_v63 }
  0xb9   : > { %v719_v13 = vunpack.c.l.bf16 %v695_v38  ;;  %v847_v15 = vmul.bf16 %v2108_v32, %v2520_v1  ;;  %v720_v7 = vunpack.c.l.bf16 %v696_v55  ;;  %v848_v31 = vmul.bf16 %v2108_v32, %v2523_v12 }
  0xba   : > { %v849_v4 = vmul.bf16 %v2108_v32, %v2538_v63  ;;  %v996_v5 = vmul.bf16 %v2110_v33, %v2597_v2  ;;  %v721_v56 = vunpack.c.l.bf16 %v697_v25  ;;  %v997_v62 = vmul.bf16 %v2110_v33, %v2604_v28 }
  0xbb   : > { %v779_v6 = vrot.slane %v719_v13, 1  ;;  %v871_v34 = vunpack.c.l.bf16 %v847_v15  ;;  %v780_v42 = vrot.slane %v720_v7, 1  ;;  %v872_v43 = vunpack.c.l.bf16 %v848_v31 }
  0xbc   : > { %v873_v45 = vunpack.c.l.bf16 %v849_v4  ;;  %v1012_v46 = vunpack.c.l.bf16 %v996_v5  ;;  %v782_v47 = vrot.slane %v721_v56, 1  ;;  %v1013_v50 = vunpack.c.l.bf16 %v997_v62 }
  0xbd   : > { %v931_v49 = vrot.slane %v871_v34, 2  ;;  %v1045_v51 = vmul.bf16 %v2175_v54, %v2597_v2  ;;  %v781_v53 = vsel %vm397_vm1, %v779_v6, %v780_v42  ;;  %v932_v59 = vrot.slane %v872_v43, 2 }
  0xbe   : > { %v934_v16 = vrot.slane %v873_v45, 2  ;;  %v1046_v60 = vmul.bf16 %v2175_v54, %v2604_v28  ;;  %v783_v61 = vsel %vm397_vm1, %v780_v42, %v782_v47  ;;  %v817_v9 = vadd.f32 %v781_v53, %v662_v40 }
  0xbf   : > { %v1047_v17 = vmul.bf16 %v2175_v54, %v2615_v41  ;;  %v1069_v18 = vunpack.c.l.bf16 %v1045_v51  ;;  %v818_v8 = vadd.f32 %v783_v61, %v663_v48  ;;  %v933_v35 = vsel %vm550_vm0, %v931_v49, %v932_v59 }
  0xc0   : > { %v935_v23 = vsel %vm550_vm0, %v932_v59, %v934_v16  ;;  %v1070_v21 = vunpack.c.l.bf16 %v1046_v60  ;;  %v969_v19 = vadd.f32 %v933_v35, %v817_v9  ;;  %v1197_v14 = vmul.bf16 %v2177_v58, %v2597_v2 }
  0xc1   : > { %v1071_v11 = vunpack.c.l.bf16 %v1047_v17  ;;  %v1129_v22 = vrot.slane %v1069_v18, 1  ;;  %v970_v44 = vadd.f32 %v935_v23, %v818_v8  ;;  %v1198_v10 = vmul.bf16 %v2177_v58, %v2604_v28 }
  0xc2   : > { %v1130_v20 = vrot.slane %v1070_v21, 1  ;;  %v1199_v37 = vmul.bf16 %v2177_v58, %v2615_v41  ;;  %v1221_v29 = vunpack.c.l.bf16 %v1197_v14  ;;  %v296_v40 = vmul.bf16 %v2096_v24, %v2520_v1 }
  0xc3   : > { %v1132_v36 = vrot.slane %v1071_v11, 1  ;;  %v1222_v27 = vunpack.c.l.bf16 %v1198_v10  ;;  %v1335_v55 = vadd.f32 %v969_v19, %v619_v57  ;;  %v1336_v7 = vadd.f32 %v970_v44, %v620_v3 }
  0xc4   : > { %v1131_v38 = vsel %vm397_vm1, %v1129_v22, %v1130_v20  ;;  %v1223_v48 = vunpack.c.l.bf16 %v1199_v37  ;;  %v1281_v15 = vrot.slane %v1221_v29, 2  ;;  %v297_v56 = vmul.bf16 %v2096_v24, %v2523_v12  ;;  %v265_v29 = vld [vmem:[%s2085_s13 + $0x6c] sm:$0xf] }
  0xc5   : > { %v1133_v25 = vsel %vm397_vm1, %v1130_v20, %v1132_v36  ;;  %v1167_v13 = vadd.f32 %v1131_v38, %v1012_v46  ;;  %v1282_v4 = vrot.slane %v1222_v27, 2  ;;  %v312_v6 = vunpack.c.l.bf16 %v296_v40  ;;  %v266_v40 = vld [vmem:[%s2085_s13 + $0x70] sm:$0xf] }
  0xc6   : > { %v1168_v31 = vadd.f32 %v1133_v25, %v1013_v50  ;;  %v1284_v5 = vrot.slane %v1223_v48, 2  ;;  %v346_v34 = vmul.bf16 %v2121_v39, %v2520_v1  ;;  %v347_v62 = vmul.bf16 %v2121_v39, %v2523_v12 }
  0xc7   : > { %v348_v57 = vmul.bf16 %v2121_v39, %v2538_v63  ;;  %v1283_v42 = vsel %vm550_vm0, %v1281_v15, %v1282_v4  ;;  %v499_v43 = vmul.bf16 %v2099_v26, %v2520_v1  ;;  %v500_v24 = vmul.bf16 %v2099_v26, %v2523_v12 }
  0xc8   : > { %v1285_v3 = vsel %vm550_vm0, %v1282_v4, %v1284_v5  ;;  %v1319_v45 = vadd.f32 %v1283_v42, %v1167_v13  ;;  %v370_v47 = vunpack.c.l.bf16 %v346_v34  ;;  %v371_v49 = vunpack.c.l.bf16 %v347_v62 }
  0xc9   : > { %v1320_v46 = vadd.f32 %v1285_v3, %v1168_v31  ;;  %v372_v50 = vunpack.c.l.bf16 %v348_v57  ;;  %v501_v51 = vmul.bf16 %v2099_v26, %v2538_v63  ;;  %v523_v53 = vunpack.c.l.bf16 %v499_v43 }
  0xca   : > { %v524_v39 = vunpack.c.l.bf16 %v500_v24  ;;  %v1358_v59 = vadd.f32 %v2577_v52, %v1319_v45  ;;  %v433_v60 = vrot.slane %v370_v47, 1  ;;  %v434_v61 = vrot.slane %v371_v49, 1 }
  0xcb   : > { %v1359_v16 = vadd.f32 %v2577_v52, %v1320_v46  ;;  %v436_v1 = vrot.slane %v372_v50, 1  ;;  %v525_v9 = vunpack.c.l.bf16 %v501_v51  ;;  %v586_v17 = vrot.slane %v523_v53, 2 }
  0xcc   : > { %v587_v12 = vrot.slane %v524_v39, 2  ;;  %v1374_v18 = vadd.f32 %v1358_v59, %v1335_v55  ;;  %v435_v35 = vsel %vm397_vm1, %v433_v60, %v434_v61  ;;  %v648_v26 = vmul.bf16 %v2105_v30, %v2597_v2 }
  0xcd   : > { %v1375_v8 = vadd.f32 %v1359_v16, %v1336_v7  ;;  %v313_v63 = vunpack.c.l.bf16 %v297_v56  ;;  %v437_v21 = vsel %vm397_vm1, %v434_v61, %v436_v1  ;;  %v468_v19 = vadd.f32 %v435_v35, %v312_v6 }
  0xce   : > { %v649_v11 = vmul.bf16 %v2105_v30, %v2604_v28  ;;  %v588_v22 = vsel %vm550_vm0, %v586_v17, %v587_v12  ;;  %v589_v14 = vrot.slane %v525_v9, 2  ;;  %v698_v44 = vmul.bf16 %v2136_v0, %v2597_v2 }
  0xcf   : > { %v1384_v23 = vpack.c.bf16 %v1375_v8, %v1374_v18  ;;  %v699_v20 = vmul.bf16 %v2136_v0, %v2604_v28  ;;  %v664_v10 = vunpack.c.l.bf16 %v648_v26  ;;  %v700_v36 = vmul.bf16 %v2136_v0, %v2615_v41  ;;  %v267_v0 = vld [vmem:[%s2085_s13 + $0x74] sm:$0x1] }
  0xd0   : > { %v665_v37 = vunpack.c.l.bf16 %v649_v11  ;;  %v850_v30 = vmul.bf16 %v2108_v32, %v2597_v2  ;;  %v722_v38 = vunpack.c.l.bf16 %v698_v44  ;;  %v851_v48 = vmul.bf16 %v2108_v32, %v2604_v28 }
  0xd1   : > { %1836 = vmatprep.mubr.msk.bf16.mxu1 %vm1425_vm2, %v1384_v23  ;;  %v723_v27 = vunpack.c.l.bf16 %v699_v20  ;;  %v852_v55 = vmul.bf16 %v2108_v32, %v2615_v41  ;;  %v724_v25 = vunpack.c.l.bf16 %v700_v36  ;;  %v998_v15 = vmul.bf16 %v2110_v33, %v265_v29 }
  0xd2   : > { %v874_v13 = vunpack.c.l.bf16 %v850_v30  ;;  %v999_v7 = vmul.bf16 %v2110_v33, %v266_v40  ;;  %v784_v31 = vrot.slane %v722_v38, 1  ;;  %v875_v2 = vunpack.c.l.bf16 %v851_v48  ;;  %v1785_v48 = vld [vmem:[%s2768_s4] ss:$0 sm:$0xff] }
  0xd3   : > { %v785_v4 = vrot.slane %v723_v27, 1  ;;  %v876_v5 = vunpack.c.l.bf16 %v852_v55  ;;  %v469_v56 = vadd.f32 %v437_v21, %v313_v63  ;;  %v590_v6 = vsel %vm550_vm0, %v587_v12, %v589_v14 }
  0xd4   : > { %v787_v34 = vrot.slane %v724_v25, 1  ;;  %v936_v62 = vrot.slane %v874_v13, 2  ;;  %v937_v57 = vrot.slane %v875_v2, 2  ;;  %v1048_v41 = vmul.bf16 %v2175_v54, %v265_v29 }
  0xd5   : > { %v786_v28 = vsel %vm397_vm1, %v784_v31, %v785_v4  ;;  %v939_v32 = vrot.slane %v876_v5, 2  ;;  %v1014_v3 = vunpack.c.l.bf16 %v998_v15  ;;  %v1049_v33 = vmul.bf16 %v2175_v54, %v266_v40 }
  0xd6   : > { %v788_v42 = vsel %vm397_vm1, %v785_v4, %v787_v34  ;;  %v1050_v43 = vmul.bf16 %v2175_v54, %v267_v0  ;;  %v819_v24 = vadd.f32 %v786_v28, %v664_v10  ;;  %v1015_v46 = vunpack.c.l.bf16 %v999_v7 }
  0xd7   : > { %v820_v45 = vadd.f32 %v788_v42, %v665_v37  ;;  %v1072_v47 = vunpack.c.l.bf16 %v1048_v41  ;;  %v938_v49 = vsel %vm550_vm0, %v936_v62, %v937_v57  ;;  %v1073_v50 = vunpack.c.l.bf16 %v1049_v33 }
  0xd8   : > { %v1074_v51 = vunpack.c.l.bf16 %v1050_v43  ;;  %v1200_v53 = vmul.bf16 %v2177_v58, %v265_v29  ;;  %v940_v39 = vsel %vm550_vm0, %v937_v57, %v939_v32  ;;  %v1201_v16 = vmul.bf16 %v2177_v58, %v266_v40 }
  0xd9   : > { %v1134_v59 = vrot.slane %v1072_v47, 1  ;;  %v1202_v60 = vmul.bf16 %v2177_v58, %v267_v0  ;;  %v621_v61 = vadd.f32 %v588_v22, %v468_v19  ;;  %v1135_v1 = vrot.slane %v1073_v50, 1 }
  0xda   : > { %v1137_v54 = vrot.slane %v1074_v51, 1  ;;  %v1224_v9 = vunpack.c.l.bf16 %v1200_v53  ;;  %v622_v17 = vadd.f32 %v590_v6, %v469_v56  ;;  %v971_v12 = vadd.f32 %v938_v49, %v819_v24 }
  0xdb   : > { %v1225_v18 = vunpack.c.l.bf16 %v1201_v16  ;;  %v1226_v8 = vunpack.c.l.bf16 %v1202_v60  ;;  %v972_v35 = vadd.f32 %v940_v39, %v820_v45  ;;  %v1136_v26 = vsel %vm397_vm1, %v1134_v59, %v1135_v1 }
  0xdc   : > { %v1138_v63 = vsel %vm397_vm1, %v1135_v1, %v1137_v54  ;;  %v1286_v23 = vrot.slane %v1224_v9, 2  ;;  %v1169_v21 = vadd.f32 %v1136_v26, %v1014_v3  ;;  %v1337_v10 = vadd.f32 %v971_v12, %v621_v61 }
  0xdd   : > { %v1170_v11 = vadd.f32 %v1138_v63, %v1015_v46  ;;  %v1287_v14 = vrot.slane %v1225_v18, 2  ;;  %v1289_v44 = vrot.slane %v1226_v8, 2  ;;  %v1338_v37 = vadd.f32 %v972_v35, %v622_v17 }
  0xdf   : > { %v1288_v58 = vsel %vm550_vm0, %v1286_v23, %v1287_v14  ;;  %v1290_v19 = vsel %vm550_vm0, %v1287_v14, %v1289_v44 }
  0xe0   : > { %v1321_v22 = vadd.f32 %v1288_v58, %v1169_v21  ;;  %v1322_v20 = vadd.f32 %v1290_v19, %v1170_v11 }
  0xe2   : > { %v1360_v36 = vadd.f32 %v2577_v52, %v1321_v22  ;;  %v1361_v30 = vadd.f32 %v2577_v52, %v1322_v20 }
  0xe4   : > { %v1376_v29 = vadd.f32 %v1360_v36, %v1337_v10  ;;  %v1377_v40 = vadd.f32 %v1361_v30, %v1338_v37 }
  0xe6   : > { %v1385_v38 = vpack.c.bf16 %v1377_v40, %v1376_v29 }
  0xe8   : > { %1837 = vmatmul.mubr.msk.bf16.gmra.mxu1 %vm1425_vm2, %v1385_v38 }
 0x117   : > { %v1826_v27 = vpop.f32.mrf.mxu0 }
 0x118   : > { %v1493_v0 = vadd.f32 %v1826_v27, %v1785_v48 }
 0x119   : > { %v1484_v55 = vpop.f32.mrf.mxu0 }
 0x11a   : > { %v1485_v25 = vadd.f32 %v1785_v48, %v1484_v55 }
 0x11b   : > { %v1827_v13 = vpop.f32.mrf.mxu0 }
 0x11c   : > { %1547 = vxpose.xlu0.b32.start [1/16] %v1485_v25, 128  ;;  %v1496_v52 = vadd.f32 %v1827_v13, %v1785_v48 }
 0x11d   : > { %v1487_v15 = vpop.f32.mrf.mxu0 }
 0x11e   : > { %v1488_v7 = vadd.f32 %v1785_v48, %v1487_v15 }
 0x120   : > { %1548 = vxpose.xlu0.b32.cont [2/16] %v1488_v7, 128 }
 0x124   : > { %1549 = vxpose.xlu0.b32.cont [3/16] %v1493_v0, 128 }
 0x128   : > { %1550 = vxpose.xlu0.b32.cont [4/16] %v1496_v52, 128 }
 0x148   : > { %v1830_v31 = vpop.f32.mrf.mxu0 }
 0x149   : > { %v1509_v34 = vadd.f32 %v1830_v31, %v1785_v48 }
 0x14a   : > { %v1500_v4 = vpop.f32.mrf.mxu0 }
 0x14b   : > { %v1501_v2 = vadd.f32 %v1785_v48, %v1500_v4 }
 0x14c   : > { %v1831_v5 = vpop.f32.mrf.mxu0 }
 0x14d   : > { %1551 = vxpose.xlu0.b32.cont [5/16] %v1501_v2, 128  ;;  %v1512_v62 = vadd.f32 %v1831_v5, %v1785_v48 }
 0x14e   : > { %v1503_v56 = vpop.f32.mrf.mxu0 }
 0x14f   : > { %v1504_v6 = vadd.f32 %v1785_v48, %v1503_v56 }
 0x151   : > { %1552 = vxpose.xlu0.b32.cont [6/16] %v1504_v6, 128 }
 0x155   : > { %1553 = vxpose.xlu0.b32.cont [7/16] %v1509_v34, 128 }
 0x159   : > { %1554 = vxpose.xlu0.b32.cont [8/16] %v1512_v62, 128 }
 0x178   : > { %v1834_v28 = vpop.f32.mrf.mxu1 }
 0x179   : > { %v1525_v33 = vadd.f32 %v1834_v28, %v1785_v48 }
 0x17a   : > { %v1516_v57 = vpop.f32.mrf.mxu1 }
 0x17b   : > { %v1517_v32 = vadd.f32 %v1785_v48, %v1516_v57 }
 0x17c   : > { %v1835_v41 = vpop.f32.mrf.mxu1 }
 0x17d   : > { %1555 = vxpose.xlu0.b32.cont [9/16] %v1517_v32, 128  ;;  %v1528_v43 = vadd.f32 %v1835_v41, %v1785_v48 }
 0x17e   : > { %v1519_v42 = vpop.f32.mrf.mxu1 }
 0x17f   : > { %v1520_v3 = vadd.f32 %v1785_v48, %v1519_v42 }
 0x181   : > { %1556 = vxpose.xlu0.b32.cont [10/16] %v1520_v3, 128 }
 0x185   : > { %1557 = vxpose.xlu0.b32.cont [11/16] %v1525_v33, 128 }
 0x189   : > { %1558 = vxpose.xlu0.b32.cont [12/16] %v1528_v43, 128 }
 0x1a8   : > { %v1838_v24 = vpop.f32.mrf.mxu1 }
 0x1a9   : > { %v1541_v51 = vadd.f32 %v1838_v24, %v1785_v48 }
 0x1aa   : > { %v1532_v45 = vpop.f32.mrf.mxu1 }
 0x1ab   : > { %v1533_v46 = vadd.f32 %v1785_v48, %v1532_v45 }
 0x1ac   : > { %v1839_v47 = vpop.f32.mrf.mxu1 }
 0x1ad   : > { %1559 = vxpose.xlu0.b32.cont [13/16] %v1533_v46, 128  ;;  %v1544_v53 = vadd.f32 %v1839_v47, %v1785_v48 }
 0x1ae   : > { %v1535_v49 = vpop.f32.mrf.mxu1 }
 0x1af   : > { %v1536_v50 = vadd.f32 %v1785_v48, %v1535_v49 }
 0x1b1   : > { %1560 = vxpose.xlu0.b32.cont [14/16] %v1536_v50, 128 }
 0x1b5   : > { %1561 = vxpose.xlu0.b32.cont [15/16] %v1541_v51, 128 }
 0x1b9   : > { %1562 = vxpose.xlu0.b32.end [16/16] %v1544_v53, 128 }
 0x1f9   : > { %v1563_v39 = vpop.trf.xlu0 }
 0x1fa   : > { %1579 = vst [vmem:[%s2702_s10] sm:$0xff] %v1563_v39 }
 0x1fd   : > { %v1564_v59 = vpop.trf.xlu0 }
 0x1fe   : > { %1580 = vst [vmem:[%s2702_s10 + $0x8] sm:$0xff] %v1564_v59 }
 0x201   : > { %v1565_v16 = vpop.trf.xlu0  ;;  %v1664_v21 = vld [vmem:[%s2702_s10] sm:$0xff] (%p2042_p5) }
 0x202   : > { %1581 = vst [vmem:[%s2702_s10 + $0x10] sm:$0xff] %v1565_v16  ;;  %1665 = vst [vmem:[%s1605_s15] sm:$0xff] (%p2042_p5), %v1664_v21 }
 0x205   : > { %v1566_v60 = vpop.trf.xlu0  ;;  %v1666_v11 = vld [vmem:[%s2702_s10 + $0x8] sm:$0xff] (%p2042_p5) }
 0x206   : > { %1582 = vst [vmem:[%s2702_s10 + $0x18] sm:$0xff] %v1566_v60  ;;  %1667 = vst [vmem:[%s1605_s15 + $0x10] sm:$0xff] (%p2042_p5), %v1666_v11 }
 0x209   : > { %v1567_v61 = vpop.trf.xlu0  ;;  %v1668_v14 = vld [vmem:[%s2702_s10 + $0x10] sm:$0xff] (%p2042_p5) }
 0x20a   : > { %1583 = vst [vmem:[%s2702_s10 + $0x20] sm:$0xff] %v1567_v61  ;;  %1669 = vst [vmem:[%s1605_s15 + $0x20] sm:$0xff] (%p2042_p5), %v1668_v14 }
 0x20d   : > { %v1568_v1 = vpop.trf.xlu0  ;;  %v1670_v44 = vld [vmem:[%s2702_s10 + $0x18] sm:$0xff] (%p2042_p5) }
 0x20e   : > { %1584 = vst [vmem:[%s2702_s10 + $0x28] sm:$0xff] %v1568_v1  ;;  %1671 = vst [vmem:[%s1605_s15 + $0x30] sm:$0xff] (%p2042_p5), %v1670_v44 }
 0x211   : > { %v1569_v54 = vpop.trf.xlu0  ;;  %v1672_v58 = vld [vmem:[%s2702_s10 + $0x20] sm:$0xff] (%p2042_p5) }
 0x212   : > { %1585 = vst [vmem:[%s2702_s10 + $0x30] sm:$0xff] %v1569_v54  ;;  %1673 = vst [vmem:[%s1605_s15 + $0x40] sm:$0xff] (%p2042_p5), %v1672_v58 }
 0x215   : > { %v1570_v9 = vpop.trf.xlu0  ;;  %v1674_v19 = vld [vmem:[%s2702_s10 + $0x28] sm:$0xff] (%p2042_p5) }
 0x216   : > { %1586 = vst [vmem:[%s2702_s10 + $0x38] sm:$0xff] %v1570_v9  ;;  %1675 = vst [vmem:[%s1605_s15 + $0x50] sm:$0xff] (%p2042_p5), %v1674_v19 }
 0x219   : > { %v1571_v17 = vpop.trf.xlu0  ;;  %v1676_v22 = vld [vmem:[%s2702_s10 + $0x30] sm:$0xff] (%p2042_p5) }
 0x21a   : > { %1587 = vst [vmem:[%s2702_s10 + $0x40] sm:$0xff] %v1571_v17  ;;  %1677 = vst [vmem:[%s1605_s15 + $0x60] sm:$0xff] (%p2042_p5), %v1676_v22 }
 0x21d   : > { %v1572_v12 = vpop.trf.xlu0  ;;  %v1678_v20 = vld [vmem:[%s2702_s10 + $0x38] sm:$0xff] (%p2042_p5) }
 0x21e   : > { %1588 = vst [vmem:[%s2702_s10 + $0x48] sm:$0xff] %v1572_v12  ;;  %1679 = vst [vmem:[%s1605_s15 + $0x70] sm:$0xff] (%p2042_p5), %v1678_v20 }
 0x221   : > { %v1573_v18 = vpop.trf.xlu0  ;;  %v1680_v10 = vld [vmem:[%s2702_s10 + $0x40] sm:$0xff] (%p2042_p5) }
 0x222   : > { %1589 = vst [vmem:[%s2702_s10 + $0x50] sm:$0xff] %v1573_v18  ;;  %1681 = vst [vmem:[%s1605_s15 + $0x80] sm:$0xff] (%p2042_p5), %v1680_v10 }
 0x225   : > { %v1574_v8 = vpop.trf.xlu0  ;;  %v1682_v37 = vld [vmem:[%s2702_s10 + $0x48] sm:$0xff] (%p2042_p5) }
 0x226   : > { %1590 = vst [vmem:[%s2702_s10 + $0x58] sm:$0xff] %v1574_v8  ;;  %1683 = vst [vmem:[%s1605_s15 + $0x90] sm:$0xff] (%p2042_p5), %v1682_v37 }
 0x229   : > { %v1575_v35 = vpop.trf.xlu0  ;;  %v1684_v36 = vld [vmem:[%s2702_s10 + $0x50] sm:$0xff] (%p2042_p5) }
 0x22a   : > { %1591 = vst [vmem:[%s2702_s10 + $0x60] sm:$0xff] %v1575_v35  ;;  %1685 = vst [vmem:[%s1605_s15 + $0xa0] sm:$0xff] (%p2042_p5), %v1684_v36 }
 0x22d   : > { %v1576_v26 = vpop.trf.xlu0  ;;  %v1686_v30 = vld [vmem:[%s2702_s10 + $0x58] sm:$0xff] (%p2042_p5) }
 0x22e   : > { %1592 = vst [vmem:[%s2702_s10 + $0x68] sm:$0xff] %v1576_v26  ;;  %1687 = vst [vmem:[%s1605_s15 + $0xb0] sm:$0xff] (%p2042_p5), %v1686_v30 }
 0x231   : > { %v1577_v63 = vpop.trf.xlu0  ;;  %v1688_v29 = vld [vmem:[%s2702_s10 + $0x60] sm:$0xff] (%p2042_p5) }
 0x232   : > { %1593 = vst [vmem:[%s2702_s10 + $0x70] sm:$0xff] %v1577_v63  ;;  %1601 = sbr.rel (!%p2042_p5) target bundleno = 575 (0x23f), region = 44  ;;  %1689 = vst [vmem:[%s1605_s15 + $0xc0] sm:$0xff] (%p2042_p5), %v1688_v29 }
 0x235   : > { %v1578_v23 = vpop.trf.xlu0  ;;  %v1690_v40 = vld [vmem:[%s2702_s10 + $0x68] sm:$0xff] (%p2042_p5) }
 0x236   : > { %1594 = vst [vmem:[%s2702_s10 + $0x78] sm:$0xff] %v1578_v23  ;;  %1691 = vst [vmem:[%s1605_s15 + $0xd0] sm:$0xff] (%p2042_p5), %v1690_v40 }
 0x239   : > { %v1692_v38 = vld [vmem:[%s2702_s10 + $0x70] sm:$0xff] }
 0x23a   : > { %1693 = vst [vmem:[%s1605_s15 + $0xe0] sm:$0xff] %v1692_v38 }
 0x23d   : > { %v1694_v27 = vld [vmem:[%s2702_s10 + $0x78] sm:$0xff] }
 0x23e   : > { %1695 = vst [vmem:[%s1605_s15 + $0xf0] sm:$0xff] %v1694_v27 }
 0x23f PF: > { %s15_s24 = sadd.s32 1, %s1964_s24   ;;  %s2771_s18 = smov %s1944_s19 }
 0x240   : > { %p12_p10 = scmp.ge.s32.totalorder %s15_s24, 6   ;;  %s2772_s19 = smov %s2053_s8 }
 0x241   : > { %s2773_s20 = smov %s1956_s22  ;;  %s2774_s21 = smov %s1960_s23 }
 0x242   : > { %s2775_s22 = smov %s2778_s25  ;;  %s2776_s23 = smov %s2782_s26 }
 0x243   :  { %14 = sbr.rel (!%p12_p10) target bundleno = 4 (0x4), region = 109 }

</bundles_post_ra>
